<compile_context>
chip_gen: v5e
topology: v5e:2x2
jax: 0.10.0
libtpu: 0.0.40
codegen_flags: <defaults>
</compile_context>

<pallas_src>
import jax
import jax.numpy as jnp
from jax.experimental import pallas as pl
from jax.experimental.pallas import tpu as pltpu

LANE = 128
MAX_TILE_M = 2048   # f32 x tile 2048x1024 = 8 MiB (x2 buffers) -> fits 48 MiB scoped VMEM


def _round_up(x, m):
    return ((x + m - 1) // m) * m


def mlp_kernel(x_ref, w1_ref, b1_ref, w2_ref, b2_ref, w3_ref, b3_ref, o_ref):
    # fc1: cast the activation to bf16 only at the MXU input; accumulate in f32.
    x = x_ref[...].astype(jnp.bfloat16)
    h1 = jnp.dot(x, w1_ref[...], preferred_element_type=jnp.float32)
    h1 = jnp.maximum(h1 + b1_ref[...], 0.0)            # bias + ReLU stay f32 (VPU)
    # fc2
    h2 = jnp.dot(h1.astype(jnp.bfloat16), w2_ref[...],
                 preferred_element_type=jnp.float32)
    h2 = jnp.maximum(h2 + b2_ref[...], 0.0)
    # fc3 (no activation); output kept f32 for torch-equivalent semantics.
    out = jnp.dot(h2.astype(jnp.bfloat16), w3_ref[...],
                  preferred_element_type=jnp.float32)
    o_ref[...] = (out + b3_ref[...]).astype(o_ref.dtype)


def _build_call(tile_m, n_eff, dims, x_dtype, single_buffer_weights):
    d_in, d_h1, d_h2, d_out = dims

    def const_spec(shape):
        if single_buffer_weights:
            # Constant blocks (index_map always (0,0)) need no double buffering.
            return pl.BlockSpec(shape, lambda i: (0, 0),
                                pipeline_mode=pl.Buffered(1))
        return pl.BlockSpec(shape, lambda i: (0, 0))

    flops = 2 * n_eff * (d_in * d_h1 + d_h1 * d_h2 + d_h2 * d_out)
    bytes_accessed = int(
        n_eff * d_in * jnp.dtype(x_dtype).itemsize          # activations (native dtype)
        + (d_in * d_h1 + d_h1 * d_h2 + d_h2 * d_out) * 2    # bf16 weights
        + (d_h1 + d_h2 + d_out) * 4                         # f32 biases
        + n_eff * d_out * 4                                  # f32 output
    )

    return pl.pallas_call(
        mlp_kernel,
        out_shape=jax.ShapeDtypeStruct((n_eff, d_out), jnp.float32),
        grid=(pl.cdiv(n_eff, tile_m),),
        in_specs=[
            pl.BlockSpec((tile_m, d_in), lambda i: (i, 0)),  # x: tiled over batch
            const_spec((d_in, d_h1)),
            const_spec((1, d_h1)),
            const_spec((d_h1, d_h2)),
            const_spec((1, d_h2)),
            const_spec((d_h2, d_out)),
            const_spec((1, d_out)),
        ],
        out_specs=pl.BlockSpec((tile_m, d_out), lambda i: (i, 0)),
        compiler_params=pltpu.CompilerParams(
            dimension_semantics=("parallel",),   # batch tiles shard over TCs (v7x)
            vmem_limit_bytes=48 * 1024 * 1024,
        ),
        cost_estimate=pl.CostEstimate(
            flops=flops, transcendentals=0, bytes_accessed=bytes_accessed),
    )


def mlp_forward(x, packed_params, output_size):
    """x: any shape with a leading batch dim (e.g. NCHW). Returns (N, output_size) f32."""
    w1, b1, w2, b2, w3, b3 = packed_params
    d_in, d_h1 = w1.shape
    d_h2 = w2.shape[1]
    d_out = w3.shape[1]

    n = x.shape[0]
    x2d = x.reshape(n, -1)              # torch-style view(batch, -1); dtype untouched
    assert x2d.shape[1] == d_in, (
        f"flattened feature count {x2d.shape[1]} != fc1 input dim {d_in}")

    # Up to 2048 rows/tile, but keep >=2 grid steps when n > 16 (v7x megacore);
    # 16-row minimum keeps the bf16 intermediates tile-native on all generations.
    tile_m = min(MAX_TILE_M, max(16, _round_up(pl.cdiv(n, 2), 16)))
    if n < tile_m:                      # tiny batch: pad up to a single tile
        x2d = jnp.pad(x2d, ((0, tile_m - n), (0, 0)))
    n_eff = x2d.shape[0]                # larger n: partial tail block handled by Pallas

    dims = (d_in, d_h1, d_h2, d_out)
    try:
        out = _build_call(tile_m, n_eff, dims, x2d.dtype, True)(
            x2d, w1, b1, w2, b2, w3, b3)
    except Exception:
        # JAX versions without BlockSpec(pipeline_mode=pl.Buffered(1)): default buffering.
        out = _build_call(tile_m, n_eff, dims, x2d.dtype, False)(
            x2d, w1, b1, w2, b2, w3, b3)

    return out[:n, :output_size]


def init_params(key, input_size, output_size):
    """f32 master params matching nn.Linear default init (U(+-1/sqrt(fan_in))).

    Weights in (in_features, out_features) layout; biases as (1, out)."""
    def linear(k, fan_in, fan_out):
        kw, kb = jax.random.split(k)
        bound = 1.0 / (float(fan_in) ** 0.5)
        w = jax.random.uniform(kw, (fan_in, fan_out), jnp.float32, -bound, bound)
        b = jax.random.uniform(kb, (1, fan_out), jnp.float32, -bound, bound)
        return w, b

    k1, k2, k3 = jax.random.split(key, 3)
    w1, b1 = linear(k1, input_size, 200)
    w2, b2 = linear(k2, 200, 100)
    w3, b3 = linear(k3, 100, output_size)
    return (w1, b1, w2, b2, w3, b3)


def pack_params(params):
    """Lane-pad (128) hidden/output dims; weights -> bf16, biases stay f32.

    fc1's input dim stays un-padded so x never needs a wrapper-side pad/copy.
    Zero-padded weight rows/cols and zero bias entries are inert through the ReLUs."""
    w1, b1, w2, b2, w3, b3 = params

    def pad_w(w, pad_in):
        di, do = w.shape
        pi = (_round_up(di, LANE) - di) if pad_in else 0
        po = _round_up(do, LANE) - do
        return jnp.pad(w, ((0, pi), (0, po))).astype(jnp.bfloat16)

    def pad_b(b):
        do = b.shape[1]
        return jnp.pad(b, ((0, 0), (0, _round_up(do, LANE) - do))).astype(jnp.float32)

    return (pad_w(w1, False), pad_b(b1),
            pad_w(w2, True), pad_b(b2),
            pad_w(w3, True), pad_b(b3))


if __name__ == "__main__":
    key = jax.random.PRNGKey(0)
    k_x, k_p = jax.random.split(key)

    # Small NCHW input; the MLP flattens it to (batch, input_size).
    batch, channels, spatial = 2, 4, 16
    input_size = channels * spatial * spatial  # 1024
    output_size = 10

    x = jax.random.normal(k_x, (batch, channels, spatial, spatial), jnp.float32)
    master = init_params(k_p, input_size, output_size)
    packed = pack_params(master)

    out = mlp_forward(x, packed, output_size)
    jax.block_until_ready(out)
    assert out.shape == (batch, output_size)

    # Reference 1: identical math (bf16 matmul inputs, f32 accumulation) in plain JAX.
    w1, b1, w2, b2, w3, b3 = packed
    x2d = x.reshape(batch, -1).astype(jnp.bfloat16)
    h1 = jnp.maximum(jnp.dot(x2d, w1, preferred_element_type=jnp.float32) + b1, 0.0)
    h2 = jnp.maximum(
        jnp.dot(h1.astype(jnp.bfloat16), w2, preferred_element_type=jnp.float32) + b2, 0.0)
    ref = (jnp.dot(h2.astype(jnp.bfloat16), w3, preferred_element_type=jnp.float32)
           + b3)[:, :output_size]
    assert jnp.allclose(out, ref, atol=1e-2, rtol=1e-2)

    # Reference 2: torch-semantics full-f32 forward (looser tol due to bf16 weights).
    mw1, mb1, mw2, mb2, mw3, mb3 = master
    xf = x.reshape(batch, -1)
    rf = jnp.maximum(xf @ mw1 + mb1, 0.0)
    rf = jnp.maximum(rf @ mw2 + mb2, 0.0)
    rf = rf @ mw3 + mb3
    assert jnp.allclose(out, rf, atol=5e-2, rtol=5e-2)

    print("KERNEL_OK")
</pallas_src>

<mosaic_0001>
module attributes {stable_mosaic.version = 11 : i64} {
  func.func @mlp_kernel(%arg0: i32, %arg1: memref<16x1024xf32, #tpu.memory_space<vmem>>, %arg2: memref<1024x256xbf16, #tpu.memory_space<vmem>>, %arg3: memref<1x256xf32, #tpu.memory_space<vmem>>, %arg4: memref<256x128xbf16, #tpu.memory_space<vmem>>, %arg5: memref<1x128xf32, #tpu.memory_space<vmem>>, %arg6: memref<128x128xbf16, #tpu.memory_space<vmem>>, %arg7: memref<1x128xf32, #tpu.memory_space<vmem>>, %arg8: memref<16x128xf32, #tpu.memory_space<vmem>>) attributes {dimension_semantics = [#tpu.dimension_semantics<parallel>], iteration_bounds = array<i64: 1>, scalar_prefetch = 0 : i64, scratch_operands = 0 : i64, tpu.core_type = #tpu.core_type<tc>, window_params = [{transform_indices = @transform_0, window_bounds = array<i64: 16, 1024>}, {pipeline_mode = #tpu.pipeline_mode<synchronous>, transform_indices = @transform_1, window_bounds = array<i64: 1024, 256>}, {pipeline_mode = #tpu.pipeline_mode<synchronous>, transform_indices = @transform_2, window_bounds = array<i64: 1, 256>}, {pipeline_mode = #tpu.pipeline_mode<synchronous>, transform_indices = @transform_3, window_bounds = array<i64: 256, 128>}, {pipeline_mode = #tpu.pipeline_mode<synchronous>, transform_indices = @transform_4, window_bounds = array<i64: 1, 128>}, {pipeline_mode = #tpu.pipeline_mode<synchronous>, transform_indices = @transform_5, window_bounds = array<i64: 128, 128>}, {pipeline_mode = #tpu.pipeline_mode<synchronous>, transform_indices = @transform_6, window_bounds = array<i64: 1, 128>}, {transform_indices = @transform_7, window_bounds = array<i64: 16, 128>}]} {
    %c0 = arith.constant 0 : index
    %c0_0 = arith.constant 0 : index
    %0 = vector.load %arg1[%c0, %c0_0] : memref<16x1024xf32, #tpu.memory_space<vmem>>, vector<16x1024xf32>
    %1 = arith.truncf %0 : vector<16x1024xf32> to vector<16x1024xbf16>
    %c0_1 = arith.constant 0 : index
    %c0_2 = arith.constant 0 : index
    %2 = vector.load %arg2[%c0_1, %c0_2] : memref<1024x256xbf16, #tpu.memory_space<vmem>>, vector<1024x256xbf16>
    %cst = arith.constant dense<0.000000e+00> : vector<16x256xf32>
    %3 = tpu.matmul %1, %2, %cst {dimension_numbers = #tpu.dot_dimension_numbers<[1], [0], [0], [1], [0, 0, 1, 1], [], []>} : vector<16x1024xbf16>, vector<1024x256xbf16>, vector<16x256xf32> -> vector<16x256xf32>
    %c0_3 = arith.constant 0 : index
    %c0_4 = arith.constant 0 : index
    %4 = vector.load %arg3[%c0_3, %c0_4] : memref<1x256xf32, #tpu.memory_space<vmem>>, vector<1x256xf32>
    %5 = vector.broadcast %4 : vector<1x256xf32> to vector<16x256xf32>
    %6 = arith.addf %3, %5 : vector<16x256xf32>
    %cst_5 = arith.constant 0.000000e+00 : f32
    %7 = vector.broadcast %cst_5 : f32 to vector<16x256xf32>
    %8 = arith.maximumf %6, %7 : vector<16x256xf32>
    %9 = arith.truncf %8 : vector<16x256xf32> to vector<16x256xbf16>
    %c0_6 = arith.constant 0 : index
    %c0_7 = arith.constant 0 : index
    %10 = vector.load %arg4[%c0_6, %c0_7] : memref<256x128xbf16, #tpu.memory_space<vmem>>, vector<256x128xbf16>
    %cst_8 = arith.constant dense<0.000000e+00> : vector<16x128xf32>
    %11 = tpu.matmul %9, %10, %cst_8 {dimension_numbers = #tpu.dot_dimension_numbers<[1], [0], [0], [1], [0, 0, 1, 1], [], []>} : vector<16x256xbf16>, vector<256x128xbf16>, vector<16x128xf32> -> vector<16x128xf32>
    %c0_9 = arith.constant 0 : index
    %c0_10 = arith.constant 0 : index
    %12 = vector.load %arg5[%c0_9, %c0_10] : memref<1x128xf32, #tpu.memory_space<vmem>>, vector<1x128xf32>
    %13 = vector.broadcast %12 : vector<1x128xf32> to vector<16x128xf32>
    %14 = arith.addf %11, %13 : vector<16x128xf32>
    %cst_11 = arith.constant 0.000000e+00 : f32
    %15 = vector.broadcast %cst_11 : f32 to vector<16x128xf32>
    %16 = arith.maximumf %14, %15 : vector<16x128xf32>
    %17 = arith.truncf %16 : vector<16x128xf32> to vector<16x128xbf16>
    %c0_12 = arith.constant 0 : index
    %c0_13 = arith.constant 0 : index
    %18 = vector.load %arg6[%c0_12, %c0_13] : memref<128x128xbf16, #tpu.memory_space<vmem>>, vector<128x128xbf16>
    %cst_14 = arith.constant dense<0.000000e+00> : vector<16x128xf32>
    %19 = tpu.matmul %17, %18, %cst_14 {dimension_numbers = #tpu.dot_dimension_numbers<[1], [0], [0], [1], [0, 0, 1, 1], [], []>} : vector<16x128xbf16>, vector<128x128xbf16>, vector<16x128xf32> -> vector<16x128xf32>
    %c0_15 = arith.constant 0 : index
    %c0_16 = arith.constant 0 : index
    %20 = vector.load %arg7[%c0_15, %c0_16] : memref<1x128xf32, #tpu.memory_space<vmem>>, vector<1x128xf32>
    %21 = vector.broadcast %20 : vector<1x128xf32> to vector<16x128xf32>
    %22 = arith.addf %19, %21 : vector<16x128xf32>
    %c0_17 = arith.constant 0 : index
    %c0_18 = arith.constant 0 : index
    %23 = vector.load %arg8[%c0_17, %c0_18] : memref<16x128xf32, #tpu.memory_space<vmem>>, vector<16x128xf32>
    tpu.vector_store %arg8[%c0_17, %c0_18], %22 {strides = array<i32>} : memref<16x128xf32, #tpu.memory_space<vmem>>, vector<16x128xf32>,
    return
  }
  func.func @transform_0(%arg0: i32) -> (i32, i32) {
    %c0_i32 = arith.constant 0 : i32
    %c0_i32_0 = arith.constant 0 : i32
    return %arg0, %c0_i32 : i32, i32
  }
  func.func @transform_1(%arg0: i32) -> (i32, i32) {
    %c0_i32 = arith.constant 0 : i32
    %c0_i32_0 = arith.constant 0 : i32
    %c0_i32_1 = arith.constant 0 : i32
    return %c0_i32, %c0_i32_0 : i32, i32
  }
  func.func @transform_2(%arg0: i32) -> (i32, i32) {
    %c0_i32 = arith.constant 0 : i32
    %c0_i32_0 = arith.constant 0 : i32
    %c0_i32_1 = arith.constant 0 : i32
    return %c0_i32, %c0_i32_0 : i32, i32
  }
  func.func @transform_3(%arg0: i32) -> (i32, i32) {
    %c0_i32 = arith.constant 0 : i32
    %c0_i32_0 = arith.constant 0 : i32
    %c0_i32_1 = arith.constant 0 : i32
    return %c0_i32, %c0_i32_0 : i32, i32
  }
  func.func @transform_4(%arg0: i32) -> (i32, i32) {
    %c0_i32 = arith.constant 0 : i32
    %c0_i32_0 = arith.constant 0 : i32
    %c0_i32_1 = arith.constant 0 : i32
    return %c0_i32, %c0_i32_0 : i32, i32
  }
  func.func @transform_5(%arg0: i32) -> (i32, i32) {
    %c0_i32 = arith.constant 0 : i32
    %c0_i32_0 = arith.constant 0 : i32
    %c0_i32_1 = arith.constant 0 : i32
    return %c0_i32, %c0_i32_0 : i32, i32
  }
  func.func @transform_6(%arg0: i32) -> (i32, i32) {
    %c0_i32 = arith.constant 0 : i32
    %c0_i32_0 = arith.constant 0 : i32
    %c0_i32_1 = arith.constant 0 : i32
    return %c0_i32, %c0_i32_0 : i32, i32
  }
  func.func @transform_7(%arg0: i32) -> (i32, i32) {
    %c0_i32 = arith.constant 0 : i32
    %c0_i32_0 = arith.constant 0 : i32
    return %arg0, %c0_i32 : i32, i32
  }
}

module attributes {stable_mosaic.version = 11 : i64} {
  func.func @mlp_kernel(%arg0: i32, %arg1: memref<16x1024xf32, #tpu.memory_space<vmem>>, %arg2: memref<1024x256xbf16, #tpu.memory_space<vmem>>, %arg3: memref<1x256xf32, #tpu.memory_space<vmem>>, %arg4: memref<256x128xbf16, #tpu.memory_space<vmem>>, %arg5: memref<1x128xf32, #tpu.memory_space<vmem>>, %arg6: memref<128x128xbf16, #tpu.memory_space<vmem>>, %arg7: memref<1x128xf32, #tpu.memory_space<vmem>>, %arg8: memref<16x128xf32, #tpu.memory_space<vmem>>) attributes {dimension_semantics = [#tpu.dimension_semantics<parallel>], iteration_bounds = array<i64: 1>, scalar_prefetch = 0 : i64, scratch_operands = 0 : i64, tpu.core_type = #tpu.core_type<tc>, window_params = [{transform_indices = @transform_0, window_bounds = array<i64: 16, 1024>}, {pipeline_mode = #tpu.pipeline_mode<synchronous>, transform_indices = @transform_1, window_bounds = array<i64: 1024, 256>}, {pipeline_mode = #tpu.pipeline_mode<synchronous>, transform_indices = @transform_2, window_bounds = array<i64: 1, 256>}, {pipeline_mode = #tpu.pipeline_mode<synchronous>, transform_indices = @transform_3, window_bounds = array<i64: 256, 128>}, {pipeline_mode = #tpu.pipeline_mode<synchronous>, transform_indices = @transform_4, window_bounds = array<i64: 1, 128>}, {pipeline_mode = #tpu.pipeline_mode<synchronous>, transform_indices = @transform_5, window_bounds = array<i64: 128, 128>}, {pipeline_mode = #tpu.pipeline_mode<synchronous>, transform_indices = @transform_6, window_bounds = array<i64: 1, 128>}, {transform_indices = @transform_7, window_bounds = array<i64: 16, 128>}]} {
    %c0 = arith.constant 0 : index
    %c0_0 = arith.constant 0 : index
    %0 = vector.load %arg1[%c0, %c0_0] : memref<16x1024xf32, #tpu.memory_space<vmem>>, vector<16x1024xf32>
    %1 = arith.truncf %0 : vector<16x1024xf32> to vector<16x1024xbf16>
    %c0_1 = arith.constant 0 : index
    %c0_2 = arith.constant 0 : index
    %2 = vector.load %arg2[%c0_1, %c0_2] : memref<1024x256xbf16, #tpu.memory_space<vmem>>, vector<1024x256xbf16>
    %cst = arith.constant dense<0.000000e+00> : vector<16x256xf32>
    %3 = tpu.matmul %1, %2, %cst {dimension_numbers = #tpu.dot_dimension_numbers<[1], [0], [0], [1], [0, 0, 1, 1], [], []>} : vector<16x1024xbf16>, vector<1024x256xbf16>, vector<16x256xf32> -> vector<16x256xf32>
    %c0_3 = arith.constant 0 : index
    %c0_4 = arith.constant 0 : index
    %4 = vector.load %arg3[%c0_3, %c0_4] : memref<1x256xf32, #tpu.memory_space<vmem>>, vector<1x256xf32>
    %5 = vector.broadcast %4 : vector<1x256xf32> to vector<16x256xf32>
    %6 = arith.addf %3, %5 : vector<16x256xf32>
    %cst_5 = arith.constant 0.000000e+00 : f32
    %7 = vector.broadcast %cst_5 : f32 to vector<16x256xf32>
    %8 = arith.maximumf %6, %7 : vector<16x256xf32>
    %9 = arith.truncf %8 : vector<16x256xf32> to vector<16x256xbf16>
    %c0_6 = arith.constant 0 : index
    %c0_7 = arith.constant 0 : index
    %10 = vector.load %arg4[%c0_6, %c0_7] : memref<256x128xbf16, #tpu.memory_space<vmem>>, vector<256x128xbf16>
    %cst_8 = arith.constant dense<0.000000e+00> : vector<16x128xf32>
    %11 = tpu.matmul %9, %10, %cst_8 {dimension_numbers = #tpu.dot_dimension_numbers<[1], [0], [0], [1], [0, 0, 1, 1], [], []>} : vector<16x256xbf16>, vector<256x128xbf16>, vector<16x128xf32> -> vector<16x128xf32>
    %c0_9 = arith.constant 0 : index
    %c0_10 = arith.constant 0 : index
    %12 = vector.load %arg5[%c0_9, %c0_10] : memref<1x128xf32, #tpu.memory_space<vmem>>, vector<1x128xf32>
    %13 = vector.broadcast %12 : vector<1x128xf32> to vector<16x128xf32>
    %14 = arith.addf %11, %13 : vector<16x128xf32>
    %cst_11 = arith.constant 0.000000e+00 : f32
    %15 = vector.broadcast %cst_11 : f32 to vector<16x128xf32>
    %16 = arith.maximumf %14, %15 : vector<16x128xf32>
    %17 = arith.truncf %16 : vector<16x128xf32> to vector<16x128xbf16>
    %c0_12 = arith.constant 0 : index
    %c0_13 = arith.constant 0 : index
    %18 = vector.load %arg6[%c0_12, %c0_13] : memref<128x128xbf16, #tpu.memory_space<vmem>>, vector<128x128xbf16>
    %cst_14 = arith.constant dense<0.000000e+00> : vector<16x128xf32>
    %19 = tpu.matmul %17, %18, %cst_14 {dimension_numbers = #tpu.dot_dimension_numbers<[1], [0], [0], [1], [0, 0, 1, 1], [], []>} : vector<16x128xbf16>, vector<128x128xbf16>, vector<16x128xf32> -> vector<16x128xf32>
    %c0_15 = arith.constant 0 : index
    %c0_16 = arith.constant 0 : index
    %20 = vector.load %arg7[%c0_15, %c0_16] : memref<1x128xf32, #tpu.memory_space<vmem>>, vector<1x128xf32>
    %21 = vector.broadcast %20 : vector<1x128xf32> to vector<16x128xf32>
    %22 = arith.addf %19, %21 : vector<16x128xf32>
    %c0_17 = arith.constant 0 : index
    %c0_18 = arith.constant 0 : index
    %23 = vector.load %arg8[%c0_17, %c0_18] : memref<16x128xf32, #tpu.memory_space<vmem>>, vector<16x128xf32>
    tpu.vector_store %arg8[%c0_17, %c0_18], %22 {strides = array<i32>} : memref<16x128xf32, #tpu.memory_space<vmem>>, vector<16x128xf32>,
    return
  }
  func.func @transform_0(%arg0: i32) -> (i32, i32) {
    %c0_i32 = arith.constant 0 : i32
    %c0_i32_0 = arith.constant 0 : i32
    return %arg0, %c0_i32 : i32, i32
  }
  func.func @transform_1(%arg0: i32) -> (i32, i32) {
    %c0_i32 = arith.constant 0 : i32
    %c0_i32_0 = arith.constant 0 : i32
    %c0_i32_1 = arith.constant 0 : i32
    return %c0_i32, %c0_i32_0 : i32, i32
  }
  func.func @transform_2(%arg0: i32) -> (i32, i32) {
    %c0_i32 = arith.constant 0 : i32
    %c0_i32_0 = arith.constant 0 : i32
    %c0_i32_1 = arith.constant 0 : i32
    return %c0_i32, %c0_i32_0 : i32, i32
  }
  func.func @transform_3(%arg0: i32) -> (i32, i32) {
    %c0_i32 = arith.constant 0 : i32
    %c0_i32_0 = arith.constant 0 : i32
    %c0_i32_1 = arith.constant 0 : i32
    return %c0_i32, %c0_i32_0 : i32, i32
  }
  func.func @transform_4(%arg0: i32) -> (i32, i32) {
    %c0_i32 = arith.constant 0 : i32
    %c0_i32_0 = arith.constant 0 : i32
    %c0_i32_1 = arith.constant 0 : i32
    return %c0_i32, %c0_i32_0 : i32, i32
  }
  func.func @transform_5(%arg0: i32) -> (i32, i32) {
    %c0_i32 = arith.constant 0 : i32
    %c0_i32_0 = arith.constant 0 : i32
    %c0_i32_1 = arith.constant 0 : i32
    return %c0_i32, %c0_i32_0 : i32, i32
  }
  func.func @transform_6(%arg0: i32) -> (i32, i32) {
    %c0_i32 = arith.constant 0 : i32
    %c0_i32_0 = arith.constant 0 : i32
    %c0_i32_1 = arith.constant 0 : i32
    return %c0_i32, %c0_i32_0 : i32, i32
  }
  func.func @transform_7(%arg0: i32) -> (i32, i32) {
    %c0_i32 = arith.constant 0 : i32
    %c0_i32_0 = arith.constant 0 : i32
    return %arg0, %c0_i32 : i32, i32
  }
}

</mosaic_0001>

<bundles_post_ra>
// kernel: tpu_custom_call.1
= control target key start
LH: loop header
LB: loop body
LE: loop exit
PB: predicated region body
PF: predicated region fallthrough
CT: control target
= control target key end

     0   :  { %12 = vsyncpa [#allocation3], 0  ;;  %s2441_s0 = inlined_call_operand.hbm [shape: f32[16,1024], index: 0, kind: input, shape index: {}]   ;;  %s2442_s1 = inlined_call_operand.hbm [shape: bf16[1024,256], index: 1, kind: input, shape index: {}]   ;;  %s2443_s2 = inlined_call_operand.hbm [shape: f32[1,256], index: 2, kind: input, shape index: {}]   ;;  %s2444_s3 = inlined_call_operand.hbm [shape: bf16[256,128], index: 3, kind: input, shape index: {}]   ;;  %s2445_s4 = inlined_call_operand.vmem [shape: f32[1,128], index: 4, kind: input, shape index: {}]   ;;  %s2446_s5 = inlined_call_operand.hbm [shape: bf16[128,128], index: 5, kind: input, shape index: {}]   ;;  %s2447_s6 = inlined_call_operand.vmem [shape: f32[1,128], index: 6, kind: input, shape index: {}]   ;;  %s2448_s7 = inlined_call_operand.hbm [shape: f32[16,128], index: 7, kind: output, shape index: {}]  }
   0x1   :  { %13 = vsyncpa [#allocation6], 0 }
   0x2   :  { %14 = vsyncpa [#allocation9], 0  ;;  %s33_s26 = sshll.u32 %s2442_s1, 4  ;;  %s34_s26 = int_to_ptr.hbm [resolvable:$true] %s33_s26 }
   0x3   :  { %15 = vsyncpa [#allocation4], 0  ;;  %s2324_s27 = smov [#allocation5]   ;;  %s2325_s29 = smov 128  }
   0x4   :  { %s35_s28 = sshll.u32 %s2324_s27, 4  ;;  %s2326_s30 = smov 8   ;;  %s36_s28 = int_to_ptr.vmem [resolvable:$true] %s35_s28 }
   0x5   :  { %41 = dma.hbm_to_vmem [thread:$0]  %s34_s26, 16384, %s36_s28, [#allocation6], %s2325_s29, %s2325_s29, %s2326_s30  }
   0x6   :  { %s57_s10 = sshll.u32 %s2444_s3, 4  ;;  %s2327_s11 = smov [#allocation8]   ;;  %s58_s10 = int_to_ptr.hbm [resolvable:$true] %s57_s10 }
   0x7   :  { %s59_s12 = sshll.u32 %s2327_s11, 4  ;;  %s2328_s1 = smov 64   ;;  %s60_s12 = int_to_ptr.vmem [resolvable:$true] %s59_s12 }
   0x8   :  { %s2329_s13 = smov 4   ;;  %s20_s16 = sshll.u32 %s2441_s0, 4  ;;  %s21_s16 = int_to_ptr.hbm [resolvable:$true] %s20_s16 }
   0x9   :  { %65 = dma.hbm_to_vmem [thread:$0]  %s58_s10, 2048, %s60_s12, [#allocation9], %s2328_s1, %s2328_s1, %s2329_s13  }
   0xa   :  { %s2330_s17 = smov [#allocation2]   ;;  %s2331_s19 = smov 1024  }
   0xb   :  { %s22_s18 = sshll.u32 %s2330_s17, 4  ;;  %s47_s3 = sshll.u32 %s2443_s2, 4  ;;  %s23_s18 = int_to_ptr.vmem [resolvable:$true] %s22_s18  ;;  %s48_s3 = int_to_ptr.hbm [resolvable:$true] %s47_s3 }
   0xc   :  { %28 = dma.hbm_to_vmem [thread:$0]  %s21_s16, 2048, %s23_s18, [#allocation3], %s2331_s19, %s2331_s19, %s2328_s1  }
   0xd   :  { %s2332_s22 = smov [#allocation7]   ;;  %s72_s26 = sshll.u32 %s2446_s5, 4  ;;  %s73_s26 = int_to_ptr.hbm [resolvable:$true] %s72_s26 }
   0xe   :  { %s49_s23 = sshll.u32 %s2332_s22, 4  ;;  %s2333_s0 = smov [#allocation10]   ;;  %s50_s23 = int_to_ptr.vmem [resolvable:$true] %s49_s23 }
   0xf   :  { %52 = dma.hbm_to_vmem [thread:$0]  %s48_s3, 32, %s50_s23, [#allocation6]  }
  0x10   :  { %s74_s27 = sshll.u32 %s2333_s0, 4  ;;  %s75_s27 = int_to_ptr.vmem [resolvable:$true] %s74_s27 }
  0x11   :  { %80 = dma.hbm_to_vmem [thread:$0]  %s73_s26, 1024, %s75_s27, [#allocation9], %s2328_s1, %s2328_s1, %s2329_s13  }
  0x12   :  { %2316 = dma.done.wait [#allocation3], 2048  }
  0x13   :  { %2317 = vsyncadd [#allocation3], 4294965248 }
  0x14   :  { %2318 = dma.done.wait [#allocation6], 16416  }
  0x15   :  { %2319 = vsyncadd [#allocation6], 4294950880 }
  0x16   :  { %2320 = dma.done.wait [#allocation9], 3072  }
  0x17   :  { %2321 = vsyncadd [#allocation9], 4294964224  ;;  %v1457_v0 = vld [vmem:[#allocation5 + $0x70] sm:$0xf]  ;;  %v2022_v1 = vld [vmem:[#allocation5 + $0x74] sm:$0xf0] }
  0x18   :  { %v1521_v2 = vld [vmem:[#allocation5 + $0xf0] sm:$0xf]  ;;  %v1458_v3 = vor.u32 %v2022_v1, %v1457_v0  ;;  %v2038_v4 = vld [vmem:[#allocation5 + $0xf4] sm:$0xf0]  ;;  %v1449_v11 = vld [vmem:[#allocation5 + $0x60] sm:$0xf] }
  0x19   :  { %v1585_v5 = vld [vmem:[#allocation5 + $0x170] sm:$0xf]  ;;  %v2054_v6 = vld [vmem:[#allocation5 + $0x174] sm:$0xf0]  ;;  %v1522_v7 = vor.u32 %v2038_v4, %v1521_v2  ;;  %v2020_v13 = vld [vmem:[#allocation5 + $0x64] sm:$0xf0] }
  0x1a   :  { %v1586_v8 = vor.u32 %v2054_v6, %v1585_v5  ;;  %v1649_v9 = vld [vmem:[#allocation5 + $0x1f0] sm:$0xf]  ;;  %v2070_v10 = vld [vmem:[#allocation5 + $0x1f4] sm:$0xf0]  ;;  %901 = vmatpush.bf16.msra.mxu0 %v1458_v3  ;;  %v1513_v14 = vld [vmem:[#allocation5 + $0xe0] sm:$0xf]  ;;  %v1450_v16 = vor.u32 %v2020_v13, %v1449_v11 }
  0x1b   :  { %v1650_v12 = vor.u32 %v2070_v10, %v1649_v9  ;;  %v2036_v15 = vld [vmem:[#allocation5 + $0xe4] sm:$0xf0]  ;;  %915 = vmatpush.bf16.msra.mxu1 %v1522_v7  ;;  %v1577_v18 = vld [vmem:[#allocation5 + $0x160] sm:$0xf]  ;;  %v1441_v23 = vld [vmem:[#allocation5 + $0x50] sm:$0xf] }
  0x1c   :  { %929 = vmatpush.bf16.msra.mxu2 %v1586_v8  ;;  %v1514_v17 = vor.u32 %v2036_v15, %v1513_v14  ;;  %v2052_v19 = vld [vmem:[#allocation5 + $0x164] sm:$0xf0]  ;;  %v1641_v20 = vld [vmem:[#allocation5 + $0x1e0] sm:$0xf]  ;;  %v2018_v24 = vld [vmem:[#allocation5 + $0x54] sm:$0xf0] }
  0x1d   :  { %943 = vmatpush.bf16.msra.mxu3 %v1650_v12  ;;  %v1578_v21 = vor.u32 %v2052_v19, %v1577_v18  ;;  %v2068_v22 = vld [vmem:[#allocation5 + $0x1e4] sm:$0xf0]  ;;  %v1505_v26 = vld [vmem:[#allocation5 + $0xd0] sm:$0xf]  ;;  %v2034_v27 = vld [vmem:[#allocation5 + $0xd4] sm:$0xf0]  ;;  %v1442_v29 = vor.u32 %v2018_v24, %v1441_v23 }
  0x1e   :  { %v1642_v25 = vor.u32 %v2068_v22, %v1641_v20  ;;  %v1569_v28 = vld [vmem:[#allocation5 + $0x150] sm:$0xf]  ;;  %902 = vmatpush.bf16.msra.mxu0 %v1450_v16  ;;  %v2050_v30 = vld [vmem:[#allocation5 + $0x154] sm:$0xf0]  ;;  %v1506_v33 = vor.u32 %v2034_v27, %v1505_v26  ;;  %v1433_v35 = vld [vmem:[#allocation5 + $0x40] sm:$0xf] }
  0x1f   :  { %v1633_v31 = vld [vmem:[#allocation5 + $0x1d0] sm:$0xf]  ;;  %v2066_v32 = vld [vmem:[#allocation5 + $0x1d4] sm:$0xf0]  ;;  %916 = vmatpush.bf16.msra.mxu1 %v1514_v17  ;;  %v1570_v34 = vor.u32 %v2050_v30, %v1569_v28  ;;  %v2016_v36 = vld [vmem:[#allocation5 + $0x44] sm:$0xf0] }
  0x20   :  { %930 = vmatpush.bf16.msra.mxu2 %v1578_v21  ;;  %v1497_v37 = vld [vmem:[#allocation5 + $0xc0] sm:$0xf]  ;;  %v1634_v38 = vor.u32 %v2066_v32, %v1633_v31  ;;  %v2032_v39 = vld [vmem:[#allocation5 + $0xc4] sm:$0xf0]  ;;  %v1434_v44 = vor.u32 %v2016_v36, %v1433_v35  ;;  %v1425_v47 = vld [vmem:[#allocation5 + $0x30] sm:$0xf] }
  0x21   :  { %944 = vmatpush.bf16.msra.mxu3 %v1642_v25  ;;  %v1561_v40 = vld [vmem:[#allocation5 + $0x140] sm:$0xf]  ;;  %v2048_v41 = vld [vmem:[#allocation5 + $0x144] sm:$0xf0]  ;;  %v1498_v45 = vor.u32 %v2032_v39, %v1497_v37  ;;  %v2014_v48 = vld [vmem:[#allocation5 + $0x34] sm:$0xf0] }
  0x22   :  { %v1625_v42 = vld [vmem:[#allocation5 + $0x1c0] sm:$0xf]  ;;  %v2064_v43 = vld [vmem:[#allocation5 + $0x1c4] sm:$0xf0]  ;;  %903 = vmatpush.bf16.msra.mxu0 %v1442_v29  ;;  %v1562_v46 = vor.u32 %v2048_v41, %v1561_v40  ;;  %v1489_v49 = vld [vmem:[#allocation5 + $0xb0] sm:$0xf]  ;;  %v1426_v56 = vor.u32 %v2014_v48, %v1425_v47 }
  0x23   :  { %917 = vmatpush.bf16.msra.mxu1 %v1506_v33  ;;  %v1626_v50 = vor.u32 %v2064_v43, %v1625_v42  ;;  %v2030_v51 = vld [vmem:[#allocation5 + $0xb4] sm:$0xf0]  ;;  %v1553_v52 = vld [vmem:[#allocation5 + $0x130] sm:$0xf]  ;;  %v1417_v59 = vld [vmem:[#allocation5 + $0x20] sm:$0xf] }
  0x24   :  { %931 = vmatpush.bf16.msra.mxu2 %v1570_v34  ;;  %v2046_v53 = vld [vmem:[#allocation5 + $0x134] sm:$0xf0]  ;;  %v1617_v54 = vld [vmem:[#allocation5 + $0x1b0] sm:$0xf]  ;;  %v1490_v57 = vor.u32 %v2030_v51, %v1489_v49  ;;  %v2012_v60 = vld [vmem:[#allocation5 + $0x24] sm:$0xf0] }
  0x25   :  { %945 = vmatpush.bf16.msra.mxu3 %v1634_v38  ;;  %v2062_v55 = vld [vmem:[#allocation5 + $0x1b4] sm:$0xf0]  ;;  %v1554_v58 = vor.u32 %v2046_v53, %v1553_v52  ;;  %v1481_v61 = vld [vmem:[#allocation5 + $0xa0] sm:$0xf]  ;;  %v2028_v63 = vld [vmem:[#allocation5 + $0xa4] sm:$0xf0]  ;;  %v1418_v4 = vor.u32 %v2012_v60, %v1417_v59 }
  0x26   :  { %904 = vmatpush.bf16.msra.mxu0 %v1434_v44  ;;  %v1618_v62 = vor.u32 %v2062_v55, %v1617_v54  ;;  %v1545_v0 = vld [vmem:[#allocation5 + $0x120] sm:$0xf]  ;;  %v2044_v1 = vld [vmem:[#allocation5 + $0x124] sm:$0xf0]  ;;  %v1482_v5 = vor.u32 %v2028_v63, %v1481_v61  ;;  %v1409_v7 = vld [vmem:[#allocation5 + $0x10] sm:$0xf] }
  0x27   :  { %918 = vmatpush.bf16.msra.mxu1 %v1498_v45  ;;  %v1609_v2 = vld [vmem:[#allocation5 + $0x1a0] sm:$0xf]  ;;  %v2060_v3 = vld [vmem:[#allocation5 + $0x1a4] sm:$0xf0]  ;;  %v1546_v6 = vor.u32 %v2044_v1, %v1545_v0  ;;  %v2010_v8 = vld [vmem:[#allocation5 + $0x14] sm:$0xf0] }
  0x28   :  { %932 = vmatpush.bf16.msra.mxu2 %v1562_v46  ;;  %v1473_v9 = vld [vmem:[#allocation5 + $0x90] sm:$0xf]  ;;  %v1610_v10 = vor.u32 %v2060_v3, %v1609_v2  ;;  %v2026_v11 = vld [vmem:[#allocation5 + $0x94] sm:$0xf0]  ;;  %v1410_v16 = vor.u32 %v2010_v8, %v1409_v7  ;;  %v1401_v17 = vld [vmem:[#allocation5] sm:$0xf] }
  0x29   :  { %946 = vmatpush.bf16.msra.mxu3 %v1626_v50  ;;  %v1537_v12 = vld [vmem:[#allocation5 + $0x110] sm:$0xf]  ;;  %v2042_v13 = vld [vmem:[#allocation5 + $0x114] sm:$0xf0]  ;;  %v2008_v18 = vld [vmem:[#allocation5 + $0x4] sm:$0xf0]  ;;  %v1474_v19 = vor.u32 %v2026_v11, %v1473_v9 }
  0x2a   :  { %905 = vmatpush.bf16.msra.mxu0 %v1426_v56  ;;  %v1601_v14 = vld [vmem:[#allocation5 + $0x190] sm:$0xf]  ;;  %v2058_v15 = vld [vmem:[#allocation5 + $0x194] sm:$0xf0]  ;;  %v1538_v20 = vor.u32 %v2042_v13, %v1537_v12  ;;  %v1465_v21 = vld [vmem:[#allocation5 + $0x80] sm:$0xf]  ;;  %v1402_v31 = vor.u32 %v2008_v18, %v1401_v17 }
  0x2b   :  { %919 = vmatpush.bf16.msra.mxu1 %v1490_v57  ;;  %v2024_v22 = vld [vmem:[#allocation5 + $0x84] sm:$0xf0]  ;;  %v1529_v23 = vld [vmem:[#allocation5 + $0x100] sm:$0xf]  ;;  %v1602_v24 = vor.u32 %v2058_v15, %v1601_v14  ;;  %v1713_v28 = vld [vmem:[#allocation5 + $0x270] sm:$0xf] }
  0x2c   :  { %933 = vmatpush.bf16.msra.mxu2 %v1554_v58  ;;  %v2040_v25 = vld [vmem:[#allocation5 + $0x104] sm:$0xf0]  ;;  %v1593_v26 = vld [vmem:[#allocation5 + $0x180] sm:$0xf]  ;;  %v2086_v29 = vld [vmem:[#allocation5 + $0x274] sm:$0xf0]  ;;  %v1466_v35 = vor.u32 %v2024_v22, %v1465_v21 }
  0x2d   :  { %947 = vmatpush.bf16.msra.mxu3 %v1618_v62  ;;  %v2056_v27 = vld [vmem:[#allocation5 + $0x184] sm:$0xf0]  ;;  %v1777_v30 = vld [vmem:[#allocation5 + $0x2f0] sm:$0xf]  ;;  %v2102_v32 = vld [vmem:[#allocation5 + $0x2f4] sm:$0xf0]  ;;  %v1530_v36 = vor.u32 %v2040_v25, %v1529_v23  ;;  %v1714_v40 = vor.u32 %v2086_v29, %v1713_v28 }
  0x2e   :  { %906 = vmatpush.bf16.msra.mxu0 %v1418_v4  ;;  %v1841_v33 = vld [vmem:[#allocation5 + $0x370] sm:$0xf]  ;;  %v2118_v34 = vld [vmem:[#allocation5 + $0x374] sm:$0xf0]  ;;  %v1594_v39 = vor.u32 %v2056_v27, %v1593_v26  ;;  %v1705_v41 = vld [vmem:[#allocation5 + $0x260] sm:$0xf]  ;;  %v1778_v43 = vor.u32 %v2102_v32, %v1777_v30 }
  0x2f   :  { %920 = vmatpush.bf16.msra.mxu1 %v1482_v5  ;;  %v1905_v37 = vld [vmem:[#allocation5 + $0x3f0] sm:$0xf]  ;;  %v2134_v38 = vld [vmem:[#allocation5 + $0x3f4] sm:$0xf0]  ;;  %v2084_v42 = vld [vmem:[#allocation5 + $0x264] sm:$0xf0]  ;;  %v1842_v44 = vor.u32 %v2118_v34, %v1841_v33 }
  0x30   :  { %934 = vmatpush.bf16.msra.mxu2 %v1546_v6  ;;  %v1769_v45 = vld [vmem:[#allocation5 + $0x2e0] sm:$0xf]  ;;  %v2100_v46 = vld [vmem:[#allocation5 + $0x2e4] sm:$0xf0]  ;;  %v1906_v48 = vor.u32 %v2134_v38, %v1905_v37  ;;  %v105_v54 = vld [vmem:[#allocation2 + $0x10] sm:$0xff]  ;;  %v1706_v55 = vor.u32 %v2084_v42, %v1705_v41  ;;  %s2334_s9 = smov [#allocation11]  }
  0x31   :  { %948 = vmatpush.bf16.msra.mxu3 %v1610_v10  ;;  %v1833_v47 = vld [vmem:[#allocation5 + $0x360] sm:$0xf]  ;;  %v2116_v49 = vld [vmem:[#allocation5 + $0x364] sm:$0xf0]  ;;  %v1697_v56 = vld [vmem:[#allocation5 + $0x250] sm:$0xf]  ;;  %v1770_v60 = vor.u32 %v2100_v46, %v1769_v45 }
  0x32   :  { %907 = vmatpush.bf16.msra.mxu0 %v1410_v16  ;;  %v1897_v50 = vld [vmem:[#allocation5 + $0x3e0] sm:$0xf]  ;;  %v2132_v51 = vld [vmem:[#allocation5 + $0x3e4] sm:$0xf0]  ;;  %v2082_v57 = vld [vmem:[#allocation5 + $0x254] sm:$0xf0]  ;;  %v1834_v61 = vor.u32 %v2116_v49, %v1833_v47 }
  0x33   :  { %921 = vmatpush.bf16.msra.mxu1 %v1474_v19  ;;  %v103_v52 = vld [vmem:[#allocation2] sm:$0xff]  ;;  %v113_v59 = vld [vmem:[#allocation2 + $0x50] sm:$0xff]  ;;  %v2098_v63 = vld [vmem:[#allocation5 + $0x2d4] sm:$0xf0]  ;;  %v1898_v2 = vor.u32 %v2132_v51, %v1897_v50  ;;  %v1698_v9 = vor.u32 %v2082_v57, %v1697_v56  ;;  %s1382_s10 = sshll.u32 %s2334_s9, 4  ;;  %s1384_s12 = sshll.u32 %s2448_s7, 4  ;;  %s1383_s10 = int_to_ptr.vmem [resolvable:$true] %s1382_s10  ;;  %s1385_s12 = int_to_ptr.hbm [resolvable:$true] %s1384_s12 }
  0x34   :  { %935 = vmatpush.bf16.msra.mxu2 %v1538_v20  ;;  %v111_v53 = vld [vmem:[#allocation2 + $0x40] sm:$0xff]  ;;  %v1761_v62 = vld [vmem:[#allocation5 + $0x2d0] sm:$0xf]  ;;  %v2395_v1 = vpack.c.bf16 %v113_v59, %v105_v54  ;;  %v2114_v3 = vld [vmem:[#allocation5 + $0x354] sm:$0xf0] }
  0x35   :  { %949 = vmatpush.bf16.msra.mxu3 %v1602_v24  ;;  %v2393_v58 = vpack.c.bf16 %v111_v53, %v103_v52  ;;  %v1825_v0 = vld [vmem:[#allocation5 + $0x350] sm:$0xf]  ;;  %v2130_v5 = vld [vmem:[#allocation5 + $0x3d4] sm:$0xf0]  ;;  %v104_v6 = vld [vmem:[#allocation2 + $0x8] sm:$0xff]  ;;  %v1762_v12 = vor.u32 %v2098_v63, %v1761_v62 }
  0x36   :  { %908 = vmatpush.bf16.msra.mxu0 %v1402_v31  ;;  %v1889_v4 = vld [vmem:[#allocation5 + $0x3d0] sm:$0xf]  ;;  %v112_v7 = vld [vmem:[#allocation2 + $0x48] sm:$0xff]  ;;  %v106_v8 = vld [vmem:[#allocation2 + $0x18] sm:$0xff]  ;;  %v1826_v13 = vor.u32 %v2114_v3, %v1825_v0 }
  0x37   :  { %922 = vmatpush.bf16.msra.mxu1 %v1466_v35  ;;  %v2399_v10 = vpack.c.bf16 %v112_v7, %v104_v6  ;;  %v114_v11 = vld [vmem:[#allocation2 + $0x58] sm:$0xff]  ;;  %v1689_v14 = vld [vmem:[#allocation5 + $0x240] sm:$0xf]  ;;  %v2080_v15 = vld [vmem:[#allocation5 + $0x244] sm:$0xf0]  ;;  %v1890_v18 = vor.u32 %v2130_v5, %v1889_v4 }
  0x38   :  { %936 = vmatpush.bf16.msra.mxu2 %v1530_v36  ;;  %v1753_v16 = vld [vmem:[#allocation5 + $0x2c0] sm:$0xf]  ;;  %v2401_v17 = vpack.c.bf16 %v114_v11, %v106_v8  ;;  %v2096_v19 = vld [vmem:[#allocation5 + $0x2c4] sm:$0xf0]  ;;  %v1690_v24 = vor.u32 %v2080_v15, %v1689_v14  ;;  %v1681_v27 = vld [vmem:[#allocation5 + $0x230] sm:$0xf] }
  0x39   :  { %950 = vmatpush.bf16.msra.mxu3 %v1594_v39  ;;  %909 = vmatmul.bf16.vlgmr.msra.gmra.mxu0 %v2393_v58  ;;  %v1817_v20 = vld [vmem:[#allocation5 + $0x340] sm:$0xf]  ;;  %v2112_v21 = vld [vmem:[#allocation5 + $0x344] sm:$0xf0]  ;;  %v1754_v25 = vor.u32 %v2096_v19, %v1753_v16  ;;  %v2078_v28 = vld [vmem:[#allocation5 + $0x234] sm:$0xf0] }
  0x3a   :  { %957 = vmatpush.bf16.msrb.mxu0 %v1714_v40  ;;  %923 = vmatmul.bf16.vlgmr.msra.gmra.mxu1 %v2399_v10  ;;  %v1881_v22 = vld [vmem:[#allocation5 + $0x3c0] sm:$0xf]  ;;  %v2128_v23 = vld [vmem:[#allocation5 + $0x3c4] sm:$0xf0]  ;;  %v1818_v26 = vor.u32 %v2112_v21, %v1817_v20  ;;  %v1745_v29 = vld [vmem:[#allocation5 + $0x2b0] sm:$0xf]  ;;  %v1682_v36 = vor.u32 %v2078_v28, %v1681_v27 }
  0x3b   :  { %971 = vmatpush.bf16.msrb.mxu1 %v1778_v43  ;;  %937 = vmatmul.bf16.vlgmr.msra.gmra.mxu2 %v2395_v1  ;;  %v1882_v30 = vor.u32 %v2128_v23, %v1881_v22  ;;  %v2094_v31 = vld [vmem:[#allocation5 + $0x2b4] sm:$0xf0]  ;;  %v1809_v32 = vld [vmem:[#allocation5 + $0x330] sm:$0xf]  ;;  %v1673_v39 = vld [vmem:[#allocation5 + $0x220] sm:$0xf] }
  0x3c   :  { %985 = vmatpush.bf16.msrb.mxu2 %v1842_v44  ;;  %951 = vmatmul.bf16.vlgmr.msra.gmra.mxu3 %v2401_v17  ;;  %v2110_v33 = vld [vmem:[#allocation5 + $0x334] sm:$0xf0]  ;;  %v1873_v34 = vld [vmem:[#allocation5 + $0x3b0] sm:$0xf]  ;;  %v1746_v37 = vor.u32 %v2094_v31, %v1745_v29  ;;  %v2076_v40 = vld [vmem:[#allocation5 + $0x224] sm:$0xf0] }
  0x3d   :  { %999 = vmatpush.bf16.msrb.mxu3 %v1906_v48  ;;  %v2126_v35 = vld [vmem:[#allocation5 + $0x3b4] sm:$0xf0]  ;;  %v1810_v38 = vor.u32 %v2110_v33, %v1809_v32  ;;  %v1737_v41 = vld [vmem:[#allocation5 + $0x2a0] sm:$0xf]  ;;  %v2092_v43 = vld [vmem:[#allocation5 + $0x2a4] sm:$0xf0]  ;;  %v1674_v48 = vor.u32 %v2076_v40, %v1673_v39 }
  0x3e   :  { %958 = vmatpush.bf16.msrb.mxu0 %v1706_v55  ;;  %v1874_v42 = vor.u32 %v2126_v35, %v1873_v34  ;;  %v1801_v44 = vld [vmem:[#allocation5 + $0x320] sm:$0xf]  ;;  %v2108_v45 = vld [vmem:[#allocation5 + $0x324] sm:$0xf0]  ;;  %v1665_v49 = vld [vmem:[#allocation5 + $0x210] sm:$0xf]  ;;  %v1738_v50 = vor.u32 %v2092_v43, %v1737_v41 }
  0x3f   :  { %972 = vmatpush.bf16.msrb.mxu1 %v1770_v60  ;;  %v1865_v46 = vld [vmem:[#allocation5 + $0x3a0] sm:$0xf]  ;;  %v2124_v47 = vld [vmem:[#allocation5 + $0x3a4] sm:$0xf0]  ;;  %v1802_v51 = vor.u32 %v2108_v45, %v1801_v44  ;;  %v2074_v52 = vld [vmem:[#allocation5 + $0x214] sm:$0xf0] }
  0x40   :  { %986 = vmatpush.bf16.msrb.mxu2 %v1834_v61  ;;  %v1729_v53 = vld [vmem:[#allocation5 + $0x290] sm:$0xf]  ;;  %v2090_v54 = vld [vmem:[#allocation5 + $0x294] sm:$0xf0]  ;;  %v1866_v55 = vor.u32 %v2124_v47, %v1865_v46  ;;  %v1657_v61 = vld [vmem:[#allocation5 + $0x200] sm:$0xf]  ;;  %v1666_v63 = vor.u32 %v2074_v52, %v1665_v49 }
  0x41   :  { %1000 = vmatpush.bf16.msrb.mxu3 %v1898_v2  ;;  %v1793_v56 = vld [vmem:[#allocation5 + $0x310] sm:$0xf]  ;;  %v2106_v57 = vld [vmem:[#allocation5 + $0x314] sm:$0xf0]  ;;  %v2072_v62 = vld [vmem:[#allocation5 + $0x204] sm:$0xf0]  ;;  %v1730_v5 = vor.u32 %v2090_v54, %v1729_v53 }
  0x42   :  { %959 = vmatpush.bf16.msrb.mxu0 %v1698_v9  ;;  %v1857_v59 = vld [vmem:[#allocation5 + $0x390] sm:$0xf]  ;;  %v2122_v60 = vld [vmem:[#allocation5 + $0x394] sm:$0xf0]  ;;  %v1721_v0 = vld [vmem:[#allocation5 + $0x280] sm:$0xf]  ;;  %v1794_v6 = vor.u32 %v2106_v57, %v1793_v56  ;;  %v1658_v19 = vor.u32 %v2072_v62, %v1657_v61 }
  0x43   :  { %973 = vmatpush.bf16.msrb.mxu1 %v1762_v12  ;;  %v2088_v2 = vld [vmem:[#allocation5 + $0x284] sm:$0xf0]  ;;  %v1785_v3 = vld [vmem:[#allocation5 + $0x300] sm:$0xf]  ;;  %v2021_v9 = vld [vmem:[#allocation5 + $0x74] sm:$0xf]  ;;  %v1858_v11 = vor.u32 %v2122_v60, %v1857_v59 }
  0x44   :  { %987 = vmatpush.bf16.msrb.mxu2 %v1826_v13  ;;  %v2104_v4 = vld [vmem:[#allocation5 + $0x304] sm:$0xf0]  ;;  %v1849_v7 = vld [vmem:[#allocation5 + $0x380] sm:$0xf]  ;;  %v1459_v12 = vld [vmem:[#allocation5 + $0x78] sm:$0xf0]  ;;  %v1722_v23 = vor.u32 %v2088_v2, %v1721_v0 }
  0x45   :  { %1001 = vmatpush.bf16.msrb.mxu3 %v1890_v18  ;;  %v2120_v8 = vld [vmem:[#allocation5 + $0x384] sm:$0xf0]  ;;  %v2037_v13 = vld [vmem:[#allocation5 + $0xf4] sm:$0xf]  ;;  %v1523_v14 = vld [vmem:[#allocation5 + $0xf8] sm:$0xf0]  ;;  %v1462_v29 = vor.u32 %v2021_v9, %v1459_v12 }
  0x46   :  { %960 = vmatpush.bf16.msrb.mxu0 %v1690_v24  ;;  %v2053_v15 = vld [vmem:[#allocation5 + $0x174] sm:$0xf]  ;;  %v1587_v16 = vld [vmem:[#allocation5 + $0x178] sm:$0xf0]  ;;  %v107_v21 = vld [vmem:[#allocation2 + $0x20] sm:$0xff]  ;;  %v1786_v24 = vor.u32 %v2104_v4, %v1785_v3  ;;  %v1850_v28 = vor.u32 %v2120_v8, %v1849_v7  ;;  %v1526_v33 = vor.u32 %v2037_v13, %v1523_v14 }
  0x47   :  { %974 = vmatpush.bf16.msrb.mxu1 %v1754_v25  ;;  %v2069_v18 = vld [vmem:[#allocation5 + $0x1f4] sm:$0xf]  ;;  %v1651_v20 = vld [vmem:[#allocation5 + $0x1f8] sm:$0xf0]  ;;  %v115_v22 = vld [vmem:[#allocation2 + $0x60] sm:$0xff]  ;;  %v1590_v34 = vor.u32 %v2053_v15, %v1587_v16 }
  0x48   :  { %988 = vmatpush.bf16.msrb.mxu2 %v1818_v26  ;;  %v109_v25 = vld [vmem:[#allocation2 + $0x30] sm:$0xff]  ;;  %v108_v27 = vld [vmem:[#allocation2 + $0x28] sm:$0xff]  ;;  %v110_v31 = vld [vmem:[#allocation2 + $0x38] sm:$0xff]  ;;  %v2405_v39 = vpack.c.bf16 %v115_v22, %v107_v21 }
  0x49   :  { %1002 = vmatpush.bf16.msrb.mxu3 %v1882_v30  ;;  %v117_v26 = vld [vmem:[#allocation2 + $0x70] sm:$0xff]  ;;  %v116_v30 = vld [vmem:[#allocation2 + $0x68] sm:$0xff]  ;;  %v118_v32 = vld [vmem:[#allocation2 + $0x78] sm:$0xff] }
  0x4a   :  { %961 = vmatpush.bf16.msrb.mxu0 %v1682_v36  ;;  %v2019_v35 = vld [vmem:[#allocation5 + $0x64] sm:$0xf]  ;;  %v1451_v36 = vld [vmem:[#allocation5 + $0x68] sm:$0xf0]  ;;  %v2407_v43 = vpack.c.bf16 %v117_v26, %v109_v25  ;;  %v2409_v44 = vpack.c.bf16 %v116_v30, %v108_v27  ;;  %v2411_v47 = vpack.c.bf16 %v118_v32, %v110_v31  ;;  %v1443_v52 = vld [vmem:[#allocation5 + $0x58] sm:$0xf0] }
  0x4b   :  { %975 = vmatpush.bf16.msrb.mxu1 %v1746_v37  ;;  %v2035_v37 = vld [vmem:[#allocation5 + $0xe4] sm:$0xf]  ;;  %v1515_v40 = vld [vmem:[#allocation5 + $0xe8] sm:$0xf0]  ;;  %v2033_v53 = vld [vmem:[#allocation5 + $0xd4] sm:$0xf] }
  0x4c   :  { %989 = vmatpush.bf16.msrb.mxu2 %v1810_v38  ;;  %v1654_v38 = vor.u32 %v2069_v18, %v1651_v20  ;;  %v2051_v41 = vld [vmem:[#allocation5 + $0x164] sm:$0xf]  ;;  %v1643_v46 = vld [vmem:[#allocation5 + $0x1e8] sm:$0xf0]  ;;  %v1518_v49 = vor.u32 %v2035_v37, %v1515_v40  ;;  %v2049_v56 = vld [vmem:[#allocation5 + $0x154] sm:$0xf] }
  0x4d   :  { %1003 = vmatpush.bf16.msrb.mxu3 %v1874_v42  ;;  %v1579_v42 = vld [vmem:[#allocation5 + $0x168] sm:$0xf0]  ;;  %v2067_v45 = vld [vmem:[#allocation5 + $0x1e4] sm:$0xf]  ;;  %v1571_v57 = vld [vmem:[#allocation5 + $0x158] sm:$0xf0] }
  0x4e   :  { %962 = vmatpush.bf16.msrb.mxu0 %v1674_v48  ;;  %v1454_v48 = vor.u32 %v2019_v35, %v1451_v36  ;;  %v1646_v54 = vor.u32 %v2067_v45, %v1643_v46  ;;  %v2065_v59 = vld [vmem:[#allocation5 + $0x1d4] sm:$0xf]  ;;  %v1635_v60 = vld [vmem:[#allocation5 + $0x1d8] sm:$0xf0]  ;;  %v2015_v0 = vld [vmem:[#allocation5 + $0x44] sm:$0xf] }
  0x4f   :  { %976 = vmatpush.bf16.msrb.mxu1 %v1738_v50  ;;  %v1582_v50 = vor.u32 %v2051_v41, %v1579_v42  ;;  %v1435_v2 = vld [vmem:[#allocation5 + $0x48] sm:$0xf0]  ;;  %v2031_v3 = vld [vmem:[#allocation5 + $0xc4] sm:$0xf]  ;;  %v1638_v4 = vor.u32 %v2065_v59, %v1635_v60  ;;  %v2013_v14 = vld [vmem:[#allocation5 + $0x34] sm:$0xf] }
  0x50   :  { %990 = vmatpush.bf16.msrb.mxu2 %v1802_v51  ;;  %v2017_v51 = vld [vmem:[#allocation5 + $0x54] sm:$0xf]  ;;  %v1563_v7 = vld [vmem:[#allocation5 + $0x148] sm:$0xf0]  ;;  %v2063_v8 = vld [vmem:[#allocation5 + $0x1c4] sm:$0xf] }
  0x51   :  { %1004 = vmatpush.bf16.msrb.mxu3 %v1866_v55  ;;  %v1507_v55 = vld [vmem:[#allocation5 + $0xd8] sm:$0xf0]  ;;  %v1446_v61 = vor.u32 %v2017_v51, %v1443_v52  ;;  %v1627_v9 = vld [vmem:[#allocation5 + $0x1c8] sm:$0xf0]  ;;  %v2029_v16 = vld [vmem:[#allocation5 + $0xb4] sm:$0xf] }
  0x52   :  { %963 = vmatpush.bf16.msrb.mxu0 %v1666_v63  ;;  %v1510_v62 = vor.u32 %v2033_v53, %v1507_v55  ;;  %v1574_v63 = vor.u32 %v2049_v56, %v1571_v57  ;;  %v1427_v15 = vld [vmem:[#allocation5 + $0x38] sm:$0xf0]  ;;  %v1630_v18 = vor.u32 %v2063_v8, %v1627_v9  ;;  %v2045_v20 = vld [vmem:[#allocation5 + $0x134] sm:$0xf]  ;;  %v2011_v27 = vld [vmem:[#allocation5 + $0x24] sm:$0xf] }
  0x53   :  { %977 = vmatpush.bf16.msrb.mxu1 %v1730_v5  ;;  %v1499_v5 = vld [vmem:[#allocation5 + $0xc8] sm:$0xf0]  ;;  %v1555_v21 = vld [vmem:[#allocation5 + $0x138] sm:$0xf0]  ;;  %v2061_v22 = vld [vmem:[#allocation5 + $0x1b4] sm:$0xf] }
  0x54   :  { %991 = vmatpush.bf16.msrb.mxu2 %v1794_v6  ;;  %v2047_v6 = vld [vmem:[#allocation5 + $0x144] sm:$0xf]  ;;  %v1502_v12 = vor.u32 %v2031_v3, %v1499_v5  ;;  %v1558_v26 = vor.u32 %v2045_v20, %v1555_v21  ;;  %v1483_v31 = vld [vmem:[#allocation5 + $0xa8] sm:$0xf0]  ;;  %v2009_v40 = vld [vmem:[#allocation5 + $0x14] sm:$0xf] }
  0x55   :  { %1005 = vmatpush.bf16.msrb.mxu3 %v1858_v11  ;;  %v1438_v11 = vor.u32 %v2015_v0, %v1435_v2  ;;  %v1566_v13 = vor.u32 %v2047_v6, %v1563_v7  ;;  %v2043_v32 = vld [vmem:[#allocation5 + $0x124] sm:$0xf]  ;;  %v1611_v35 = vld [vmem:[#allocation5 + $0x1a8] sm:$0xf0]  ;;  %v1411_v41 = vld [vmem:[#allocation5 + $0x18] sm:$0xf0] }
  0x56   :  { %964 = vmatpush.bf16.msrb.mxu0 %v1658_v19  ;;  %v1491_v19 = vld [vmem:[#allocation5 + $0xb8] sm:$0xf0]  ;;  %v2025_v42 = vld [vmem:[#allocation5 + $0x94] sm:$0xf]  ;;  %v1414_v52 = vor.u32 %v2009_v40, %v1411_v41  ;;  %v2007_v53 = vld [vmem:[#allocation5 + $0x4] sm:$0xf] }
  0x57   :  { %978 = vmatpush.bf16.msrb.mxu1 %v1722_v23  ;;  %v1619_v23 = vld [vmem:[#allocation5 + $0x1b8] sm:$0xf0]  ;;  %v1494_v25 = vor.u32 %v2029_v16, %v1491_v19  ;;  %v2023_v57 = vld [vmem:[#allocation5 + $0x84] sm:$0xf]  ;;  %v1467_v59 = vld [vmem:[#allocation5 + $0x88] sm:$0xf0] }
  0x58   :  { %992 = vmatpush.bf16.msrb.mxu2 %v1786_v24  ;;  %v1430_v24 = vor.u32 %v2013_v14, %v1427_v15  ;;  %v1622_v30 = vor.u32 %v2061_v22, %v1619_v23  ;;  %v1475_v46 = vld [vmem:[#allocation5 + $0x98] sm:$0xf0]  ;;  %v2039_v60 = vld [vmem:[#allocation5 + $0x104] sm:$0xf]  ;;  %v1595_v0 = vld [vmem:[#allocation5 + $0x188] sm:$0xf0]  ;;  %v1470_v9 = vor.u32 %v2023_v57, %v1467_v59 }
  0x59   :  { %1006 = vmatpush.bf16.msrb.mxu3 %v1850_v28  ;;  %965 = vmatmul.bf16.vlgmr.msrb.gmra.mxu0 %v2405_v39  ;;  %v1419_v28 = vld [vmem:[#allocation5 + $0x28] sm:$0xf0]  ;;  %v1603_v51 = vld [vmem:[#allocation5 + $0x198] sm:$0xf0]  ;;  %v1478_v55 = vor.u32 %v2025_v42, %v1475_v46  ;;  %v2085_v2 = vld [vmem:[#allocation5 + $0x274] sm:$0xf] }
  0x5a   :  { %1013 = vmatpush.bf16.msra.mxu0 %v1462_v29  ;;  %979 = vmatmul.bf16.vlgmr.msrb.gmra.mxu1 %v2409_v44  ;;  %v2027_v29 = vld [vmem:[#allocation5 + $0xa4] sm:$0xf]  ;;  %v1422_v36 = vor.u32 %v2011_v27, %v1419_v28  ;;  %v1715_v3 = vld [vmem:[#allocation5 + $0x278] sm:$0xf0]  ;;  %v2117_v7 = vld [vmem:[#allocation5 + $0x374] sm:$0xf] }
  0x5b   :  { %1027 = vmatpush.bf16.msra.mxu1 %v1526_v33  ;;  %993 = vmatmul.bf16.vlgmr.msrb.gmra.mxu2 %v2407_v43  ;;  %v1547_v33 = vld [vmem:[#allocation5 + $0x128] sm:$0xf0]  ;;  %v1486_v37 = vor.u32 %v2027_v29, %v1483_v31  ;;  %v1779_v6 = vld [vmem:[#allocation5 + $0x2f8] sm:$0xf0]  ;;  %v1718_v15 = vor.u32 %v2085_v2, %v1715_v3  ;;  %v2083_v16 = vld [vmem:[#allocation5 + $0x264] sm:$0xf] }
  0x5c   :  { %1041 = vmatpush.bf16.msra.mxu2 %v1590_v34  ;;  %1007 = vmatmul.bf16.vlgmr.msrb.gmra.mxu3 %v2411_v47  ;;  %v2059_v34 = vld [vmem:[#allocation5 + $0x1a4] sm:$0xf]  ;;  %v1843_v8 = vld [vmem:[#allocation5 + $0x378] sm:$0xf0]  ;;  %v1771_v22 = vld [vmem:[#allocation5 + $0x2e8] sm:$0xf0] }
  0x5d   :  { %1055 = vmatpush.bf16.msra.mxu3 %v1654_v38  ;;  %v1550_v38 = vor.u32 %v2043_v32, %v1547_v33  ;;  %v1614_v45 = vor.u32 %v2059_v34, %v1611_v35  ;;  %v1846_v20 = vor.u32 %v2117_v7, %v1843_v8  ;;  %v2099_v21 = vld [vmem:[#allocation5 + $0x2e4] sm:$0xf]  ;;  %v1899_v27 = vld [vmem:[#allocation5 + $0x3e8] sm:$0xf0]  ;;  %v2081_v31 = vld [vmem:[#allocation5 + $0x254] sm:$0xf] }
  0x5e   :  { %1014 = vmatpush.bf16.msra.mxu0 %v1454_v48  ;;  %v2041_v48 = vld [vmem:[#allocation5 + $0x114] sm:$0xf]  ;;  %v1774_v29 = vor.u32 %v2099_v21, %v1771_v22  ;;  %v1699_v32 = vld [vmem:[#allocation5 + $0x258] sm:$0xf0]  ;;  %v2079_v46 = vld [vmem:[#allocation5 + $0x244] sm:$0xf] }
  0x5f   :  { %1028 = vmatpush.bf16.msra.mxu1 %v1518_v49  ;;  %v1539_v49 = vld [vmem:[#allocation5 + $0x118] sm:$0xf0]  ;;  %v2097_v33 = vld [vmem:[#allocation5 + $0x2d4] sm:$0xf]  ;;  %v1702_v41 = vor.u32 %v2081_v31, %v1699_v32  ;;  %v2091_v7 = vld [vmem:[#allocation5 + $0x2a4] sm:$0xf] }
  0x60   :  { %1042 = vmatpush.bf16.msra.mxu2 %v1582_v50  ;;  %v2057_v50 = vld [vmem:[#allocation5 + $0x194] sm:$0xf]  ;;  %v1542_v56 = vor.u32 %v2041_v48, %v1539_v49  ;;  %v1763_v35 = vld [vmem:[#allocation5 + $0x2d8] sm:$0xf0]  ;;  %v1691_v48 = vld [vmem:[#allocation5 + $0x248] sm:$0xf0] }
  0x61   :  { %1056 = vmatpush.bf16.msra.mxu3 %v1646_v54  ;;  %v1403_v54 = vld [vmem:[#allocation5 + $0x8] sm:$0xf0]  ;;  %v1891_v40 = vld [vmem:[#allocation5 + $0x3d8] sm:$0xf0]  ;;  %v1766_v42 = vor.u32 %v2097_v33, %v1763_v35  ;;  %v2093_v57 = vld [vmem:[#allocation5 + $0x2b4] sm:$0xf] }
  0x62   :  { %1015 = vmatpush.bf16.msra.mxu0 %v1446_v61  ;;  %v1606_v61 = vor.u32 %v2057_v50, %v1603_v51  ;;  %v1406_v5 = vor.u32 %v2007_v53, %v1403_v54  ;;  %v1755_v50 = vld [vmem:[#allocation5 + $0x2c8] sm:$0xf0]  ;;  %v2111_v51 = vld [vmem:[#allocation5 + $0x344] sm:$0xf]  ;;  %v2089_v21 = vld [vmem:[#allocation5 + $0x294] sm:$0xf] }
  0x63   :  { %1029 = vmatpush.bf16.msra.mxu1 %v1510_v62  ;;  %v1531_v62 = vld [vmem:[#allocation5 + $0x108] sm:$0xf0]  ;;  %v2127_v53 = vld [vmem:[#allocation5 + $0x3c4] sm:$0xf] }
  0x64   :  { %1043 = vmatpush.bf16.msra.mxu2 %v1574_v63  ;;  %v2055_v63 = vld [vmem:[#allocation5 + $0x184] sm:$0xf]  ;;  %v1659_v32 = vld [vmem:[#allocation5 + $0x208] sm:$0xf0] }
  0x65   :  { %1057 = vmatpush.bf16.msra.mxu3 %v1638_v4  ;;  %v2101_v4 = vld [vmem:[#allocation5 + $0x2f4] sm:$0xf]  ;;  %v1598_v14 = vor.u32 %v2055_v63, %v1595_v0  ;;  %v1875_v0 = vld [vmem:[#allocation5 + $0x3b8] sm:$0xf0]  ;;  %v2071_v31 = vld [vmem:[#allocation5 + $0x204] sm:$0xf] }
  0x66   :  { %1016 = vmatpush.bf16.msra.mxu0 %v1438_v11  ;;  %v1534_v11 = vor.u32 %v2039_v60, %v1531_v62  ;;  %v1782_v19 = vor.u32 %v2101_v4, %v1779_v6  ;;  %v1747_v60 = vld [vmem:[#allocation5 + $0x2b8] sm:$0xf0]  ;;  %v2125_v63 = vld [vmem:[#allocation5 + $0x3b4] sm:$0xf]  ;;  %v1675_v6 = vld [vmem:[#allocation5 + $0x228] sm:$0xf0] }
  0x67   :  { %1030 = vmatpush.bf16.msra.mxu1 %v1502_v12  ;;  %v2133_v12 = vld [vmem:[#allocation5 + $0x3f4] sm:$0xf]  ;;  %v1811_v62 = vld [vmem:[#allocation5 + $0x338] sm:$0xf0]  ;;  %v1750_v3 = vor.u32 %v2093_v57, %v1747_v60  ;;  %v1878_v8 = vor.u32 %v2125_v63, %v1875_v0  ;;  %v2087_v33 = vld [vmem:[#allocation5 + $0x284] sm:$0xf] }
  0x68   :  { %1044 = vmatpush.bf16.msra.mxu2 %v1566_v13  ;;  %v1907_v13 = vld [vmem:[#allocation5 + $0x3f8] sm:$0xf0]  ;;  %v1723_v35 = vld [vmem:[#allocation5 + $0x288] sm:$0xf0] }
  0x69   :  { %1058 = vmatpush.bf16.msra.mxu3 %v1630_v18  ;;  %v1707_v18 = vld [vmem:[#allocation5 + $0x268] sm:$0xf0]  ;;  %v1910_v23 = vor.u32 %v2133_v12, %v1907_v13  ;;  %v2123_v13 = vld [vmem:[#allocation5 + $0x3a4] sm:$0xf] }
  0x6a   :  { %1017 = vmatpush.bf16.msra.mxu0 %v1430_v24  ;;  %v2115_v24 = vld [vmem:[#allocation5 + $0x364] sm:$0xf]  ;;  %v1710_v28 = vor.u32 %v2083_v16, %v1707_v18  ;;  %v1803_v12 = vld [vmem:[#allocation5 + $0x328] sm:$0xf0] }
  0x6b   :  { %1031 = vmatpush.bf16.msra.mxu1 %v1494_v25  ;;  %v1835_v25 = vld [vmem:[#allocation5 + $0x368] sm:$0xf0] }
  0x6c   :  { %1045 = vmatpush.bf16.msra.mxu2 %v1558_v26  ;;  %v2131_v26 = vld [vmem:[#allocation5 + $0x3e4] sm:$0xf] }
  0x6d   :  { %1059 = vmatpush.bf16.msra.mxu3 %v1622_v30  ;;  %v1838_v30 = vor.u32 %v2115_v24, %v1835_v25  ;;  %v1902_v34 = vor.u32 %v2131_v26, %v1899_v27  ;;  %v2105_v24 = vld [vmem:[#allocation5 + $0x314] sm:$0xf]  ;;  %v1795_v25 = vld [vmem:[#allocation5 + $0x318] sm:$0xf0] }
  0x6e   :  { %1018 = vmatpush.bf16.msra.mxu0 %v1422_v36  ;;  %v2113_v36 = vld [vmem:[#allocation5 + $0x354] sm:$0xf]  ;;  %v1859_v27 = vld [vmem:[#allocation5 + $0x398] sm:$0xf0] }
  0x6f   :  { %1032 = vmatpush.bf16.msra.mxu1 %v1486_v37  ;;  %v1827_v37 = vld [vmem:[#allocation5 + $0x358] sm:$0xf0]  ;;  %v2121_v26 = vld [vmem:[#allocation5 + $0x394] sm:$0xf] }
  0x70   :  { %1046 = vmatpush.bf16.msra.mxu2 %v1550_v38  ;;  %v2129_v38 = vld [vmem:[#allocation5 + $0x3d4] sm:$0xf] }
  0x71   :  { %1060 = vmatpush.bf16.msra.mxu3 %v1614_v45  ;;  %v1830_v45 = vor.u32 %v2113_v36, %v1827_v37  ;;  %v1894_v49 = vor.u32 %v2129_v38, %v1891_v40  ;;  %v2103_v36 = vld [vmem:[#allocation5 + $0x304] sm:$0xf]  ;;  %v1787_v37 = vld [vmem:[#allocation5 + $0x308] sm:$0xf0] }
  0x72   :  { %1019 = vmatpush.bf16.msra.mxu0 %v1414_v52  ;;  %v1819_v52 = vld [vmem:[#allocation5 + $0x348] sm:$0xf0]  ;;  %v2119_v38 = vld [vmem:[#allocation5 + $0x384] sm:$0xf] }
  0x73   :  { %1033 = vmatpush.bf16.msra.mxu1 %v1478_v55  ;;  %v2077_v55 = vld [vmem:[#allocation5 + $0x234] sm:$0xf]  ;;  %v1851_v40 = vld [vmem:[#allocation5 + $0x388] sm:$0xf0] }
  0x74   :  { %1047 = vmatpush.bf16.msra.mxu2 %v1542_v56  ;;  %v1683_v56 = vld [vmem:[#allocation5 + $0x238] sm:$0xf0] }
  0x75   :  { %1061 = vmatpush.bf16.msra.mxu3 %v1606_v61  ;;  %v2109_v61 = vld [vmem:[#allocation5 + $0x334] sm:$0xf]  ;;  %v1686_v2 = vor.u32 %v2077_v55, %v1683_v56 }
  0x76   :  { %1020 = vmatpush.bf16.msra.mxu0 %v1406_v5  ;;  %v1814_v4 = vor.u32 %v2109_v61, %v1811_v62  ;;  %v2075_v5 = vld [vmem:[#allocation5 + $0x224] sm:$0xf] }
  0x77   :  { %1034 = vmatpush.bf16.msra.mxu1 %v1470_v9  ;;  %v1739_v9 = vld [vmem:[#allocation5 + $0x2a8] sm:$0xf0] }
  0x78   :  { %1048 = vmatpush.bf16.msra.mxu2 %v1534_v11  ;;  %v2107_v11 = vld [vmem:[#allocation5 + $0x324] sm:$0xf]  ;;  %v1742_v16 = vor.u32 %v2091_v7, %v1739_v9 }
  0x79   :  { %1062 = vmatpush.bf16.msra.mxu3 %v1598_v14  ;;  %1021 = vmatmul.bf16.vlgmr.msra.gmra.mxu0 %v2393_v58  ;;  %v1883_v58 = vld [vmem:[#allocation5 + $0x3c8] sm:$0xf0]  ;;  %v1806_v18 = vor.u32 %v2107_v11, %v1803_v12 }
  0x7a   :  { %1069 = vmatpush.bf16.msrb.mxu0 %v1718_v15  ;;  %1035 = vmatmul.bf16.vlgmr.msra.gmra.mxu1 %v2399_v10  ;;  %v1822_v10 = vor.u32 %v2111_v51, %v1819_v52  ;;  %v1886_v59 = vor.u32 %v2127_v53, %v1883_v58  ;;  %v1867_v14 = vld [vmem:[#allocation5 + $0x3a8] sm:$0xf0]  ;;  %v1678_v15 = vor.u32 %v2075_v5, %v1675_v6  ;;  %v2138_v51 = vld [vmem:[#allocation8 + $0x18] sm:$0xff]  ;;  %v2137_v53 = vld [vmem:[#allocation8 + $0x10] sm:$0xff] }
  0x7b   :  { %1083 = vmatpush.bf16.msrb.mxu1 %v1782_v19  ;;  %1049 = vmatmul.bf16.vlgmr.msra.gmra.mxu2 %v2395_v1  ;;  %v2095_v1 = vld [vmem:[#allocation5 + $0x2c4] sm:$0xf]  ;;  %v2073_v19 = vld [vmem:[#allocation5 + $0x214] sm:$0xf]  ;;  %v1870_v22 = vor.u32 %v2123_v13, %v1867_v14  ;;  %v2425_v58 = vld [vmem:[#allocation7] sm:$0x3] }
  0x7c   :  { %1097 = vmatpush.bf16.msrb.mxu2 %v1846_v20  ;;  %1063 = vmatmul.bf16.vlgmr.msra.gmra.mxu3 %v2401_v17  ;;  %v1694_v17 = vor.u32 %v2079_v46, %v1691_v48  ;;  %v1758_v54 = vor.u32 %v2095_v1, %v1755_v50  ;;  %v1667_v20 = vld [vmem:[#allocation5 + $0x218] sm:$0xf0]  ;;  %v1854_v46 = vor.u32 %v2119_v38, %v1851_v40  ;;  %v2141_v1 = vld [vmem:[#allocation8 + $0x30] sm:$0xff]  ;;  %v2139_v50 = vld [vmem:[#allocation8 + $0x20] sm:$0xff] }
  0x7d   :  { %1111 = vmatpush.bf16.msrb.mxu3 %v1910_v23  ;;  %v1731_v23 = vld [vmem:[#allocation5 + $0x298] sm:$0xf0] }
  0x7e   :  { %1070 = vmatpush.bf16.msrb.mxu0 %v1710_v28  ;;  %v1670_v28 = vor.u32 %v2073_v19, %v1667_v20  ;;  %v2142_v48 = vld [vmem:[#allocation8 + $0x38] sm:$0xff] }
  0x7f   :  { %1084 = vmatpush.bf16.msrb.mxu1 %v1774_v29  ;;  %v1734_v29 = vor.u32 %v2089_v21, %v1731_v23 }
  0x80   :  { %1098 = vmatpush.bf16.msrb.mxu2 %v1838_v30  ;;  %v1798_v30 = vor.u32 %v2105_v24, %v1795_v25 }
  0x81   :  { %1112 = vmatpush.bf16.msrb.mxu3 %v1902_v34  ;;  %v1862_v34 = vor.u32 %v2121_v26, %v1859_v27  ;;  %v2148_v27 = vld [vmem:[#allocation8 + $0x68] sm:$0xff] }
  0x82   :  { %1071 = vmatpush.bf16.msrb.mxu0 %v1702_v41  ;;  %v1662_v41 = vor.u32 %v2071_v31, %v1659_v32  ;;  %v2144_v32 = vld [vmem:[#allocation8 + $0x48] sm:$0xff] }
  0x83   :  { %1085 = vmatpush.bf16.msrb.mxu1 %v1766_v42  ;;  %v1726_v42 = vor.u32 %v2087_v33, %v1723_v35  ;;  %v2143_v35 = vld [vmem:[#allocation8 + $0x40] sm:$0xff] }
  0x84   :  { %1099 = vmatpush.bf16.msrb.mxu2 %v1830_v45  ;;  %v1790_v45 = vor.u32 %v2103_v36, %v1787_v37 }
  0x85   :  { %1113 = vmatpush.bf16.msrb.mxu3 %v1894_v49  ;;  %v2140_v49 = vld [vmem:[#allocation8 + $0x28] sm:$0xff] }
  0x86   :  { %1072 = vmatpush.bf16.msrb.mxu0 %v1694_v17 }
  0x87   :  { %1086 = vmatpush.bf16.msrb.mxu1 %v1758_v54 }
  0x88   :  { %1100 = vmatpush.bf16.msrb.mxu2 %v1822_v10  ;;  %v2135_v10 = vld [vmem:[#allocation8] sm:$0xff] }
  0x89   :  { %1114 = vmatpush.bf16.msrb.mxu3 %v1886_v59 }
  0x8a   :  { %1073 = vmatpush.bf16.msrb.mxu0 %v1686_v2 }
  0x8b   :  { %1087 = vmatpush.bf16.msrb.mxu1 %v1750_v3 }
  0x8c   :  { %1101 = vmatpush.bf16.msrb.mxu2 %v1814_v4 }
  0x8d   :  { %1115 = vmatpush.bf16.msrb.mxu3 %v1878_v8 }
  0x8e   :  { %1074 = vmatpush.bf16.msrb.mxu0 %v1678_v15 }
  0x8f   :  { %1088 = vmatpush.bf16.msrb.mxu1 %v1742_v16 }
  0x90   :  { %1102 = vmatpush.bf16.msrb.mxu2 %v1806_v18  ;;  %v2150_v18 = vld [vmem:[#allocation8 + $0x78] sm:$0xff] }
  0x91   :  { %1116 = vmatpush.bf16.msrb.mxu3 %v1870_v22  ;;  %v2149_v22 = vld [vmem:[#allocation8 + $0x70] sm:$0xff] }
  0x92   :  { %1075 = vmatpush.bf16.msrb.mxu0 %v1670_v28  ;;  %v2147_v28 = vld [vmem:[#allocation8 + $0x60] sm:$0xff] }
  0x93   :  { %1089 = vmatpush.bf16.msrb.mxu1 %v1734_v29  ;;  %v2146_v29 = vld [vmem:[#allocation8 + $0x58] sm:$0xff] }
  0x94   :  { %1103 = vmatpush.bf16.msrb.mxu2 %v1798_v30  ;;  %v2145_v30 = vld [vmem:[#allocation8 + $0x50] sm:$0xff] }
  0x95   :  { %1117 = vmatpush.bf16.msrb.mxu3 %v1862_v34  ;;  %v258_v34 = vperm.slane %v2425_v58, 1 }
  0x96   :  { %1076 = vmatpush.bf16.msrb.mxu0 %v1662_v41 }
  0x97   :  { %1090 = vmatpush.bf16.msrb.mxu1 %v1726_v42 }
  0x98   :  { %1104 = vmatpush.bf16.msrb.mxu2 %v1790_v45 }
  0x99   :  { %1118 = vmatpush.bf16.msrb.mxu3 %v1854_v46  ;;  %1077 = vmatmul.bf16.vlgmr.msrb.gmra.mxu0 %v2405_v39 }
  0x9a   :  { %1091 = vmatmul.bf16.vlgmr.msrb.gmra.mxu1 %v2409_v44  ;;  %1263 = vmatpush.bf16.msra.mxu0 %v2142_v48  ;;  %v2136_v44 = vld [vmem:[#allocation8 + $0x8] sm:$0xff] }
  0x9b   :  { %1105 = vmatmul.bf16.vlgmr.msrb.gmra.mxu2 %v2407_v43  ;;  %v257_v43 = vperm.slane %v2425_v58, 0  ;;  %1277 = vmatpush.bf16.msra.mxu1 %v2150_v18 }
  0x9c   :  { %1119 = vmatmul.bf16.vlgmr.msrb.gmra.mxu3 %v2411_v47 }
  0x9e   :  { %1264 = vmatpush.bf16.msra.mxu0 %v2141_v1 }
  0x9f   :  { %1278 = vmatpush.bf16.msra.mxu1 %v2149_v22 }
  0xa2   :  { %1265 = vmatpush.bf16.msra.mxu0 %v2140_v49 }
  0xa3   :  { %1279 = vmatpush.bf16.msra.mxu1 %v2148_v27 }
  0xa6   :  { %1266 = vmatpush.bf16.msra.mxu0 %v2139_v50 }
  0xa7   :  { %1280 = vmatpush.bf16.msra.mxu1 %v2147_v28 }
  0xaa   :  { %1267 = vmatpush.bf16.msra.mxu0 %v2138_v51 }
  0xab   :  { %1281 = vmatpush.bf16.msra.mxu1 %v2146_v29 }
  0xae   :  { %1268 = vmatpush.bf16.msra.mxu0 %v2137_v53 }
  0xaf   :  { %1282 = vmatpush.bf16.msra.mxu1 %v2145_v30 }
  0xb2   :  { %1269 = vmatpush.bf16.msra.mxu0 %v2136_v44 }
  0xb3   :  { %1283 = vmatpush.bf16.msra.mxu1 %v2144_v32 }
  0xb6   :  { %v910_v52 = vpop.f32.mrf.mxu0  ;;  %1270 = vmatpush.bf16.msra.mxu0 %v2135_v10 }
  0xb7   :  { %v924_v39 = vpop.f32.mrf.mxu1  ;;  %v911_v17 = vadd.f32 %v910_v52, %v257_v43  ;;  %1284 = vmatpush.bf16.msra.mxu1 %v2143_v35 }
  0xb9   :  { %v925_v57 = vadd.f32 %v924_v39, %v911_v17 }
  0xbe   :  { %v938_v47 = vpop.f32.mrf.mxu2  ;;  %v912_v55 = vpop.f32.mrf.mxu0 }
  0xbf   :  { %v952_v54 = vpop.f32.mrf.mxu3  ;;  %v926_v56 = vpop.f32.mrf.mxu1  ;;  %v913_v59 = vadd.f32 %v912_v55, %v257_v43  ;;  %v939_v60 = vadd.f32 %v938_v47, %v925_v57 }
  0xc1   :  { %v927_v62 = vadd.f32 %v926_v56, %v913_v59  ;;  %v953_v0 = vadd.f32 %v952_v54, %v939_v60 }
  0xc6   :  { %v940_v61 = vpop.f32.mrf.mxu2 }
  0xc7   :  { %v954_v63 = vpop.f32.mrf.mxu3  ;;  %v941_v4 = vadd.f32 %v940_v61, %v927_v62 }
  0xc9   :  { %v955_v6 = vadd.f32 %v954_v63, %v941_v4  ;;  %v2157_v4 = vld [vmem:[#allocation10 + $0x30] sm:$0xff] }
  0xd6   :  { %v966_v2 = vpop.f32.mrf.mxu0 }
  0xd7   :  { %v980_v3 = vpop.f32.mrf.mxu1  ;;  %v967_v5 = vadd.f32 %v966_v2, %v953_v0 }
  0xd9   :  { %v981_v8 = vadd.f32 %v980_v3, %v967_v5  ;;  %v2158_v3 = vld [vmem:[#allocation10 + $0x38] sm:$0xff]  ;;  %v2156_v5 = vld [vmem:[#allocation10 + $0x28] sm:$0xff] }
  0xda   :  { %1362 = vmatpush.bf16.msra.mxu2 %v2158_v3 }
  0xde   :  { %v994_v7 = vpop.f32.mrf.mxu2  ;;  %v968_v9 = vpop.f32.mrf.mxu0  ;;  %1363 = vmatpush.bf16.msra.mxu2 %v2157_v4 }
  0xdf   :  { %v1008_v11 = vpop.f32.mrf.mxu3  ;;  %v969_v12 = vadd.f32 %v968_v9, %v955_v6  ;;  %v982_v13 = vpop.f32.mrf.mxu1  ;;  %v995_v14 = vadd.f32 %v994_v7, %v981_v8  ;;  %v2155_v6 = vld [vmem:[#allocation10 + $0x20] sm:$0xff]  ;;  %v2154_v7 = vld [vmem:[#allocation10 + $0x18] sm:$0xff]  ;;  %v2153_v8 = vld [vmem:[#allocation10 + $0x10] sm:$0xff] }
  0xe0   :  { %v2152_v9 = vld [vmem:[#allocation10 + $0x8] sm:$0xff] }
  0xe1   :  { %v983_v15 = vadd.f32 %v982_v13, %v969_v12  ;;  %v1009_v19 = vadd.f32 %v1008_v11, %v995_v14  ;;  %v2151_v11 = vld [vmem:[#allocation10] sm:$0xff]  ;;  %v2170_v14 = vld [vmem:[%s2445_s4] ss:$0 sm:$0xff] }
  0xe2   :  { %1364 = vmatpush.bf16.msra.mxu2 %v2156_v5 }
  0xe3   :  { %v1125_v24 = vmax.f32 %v1009_v19, 0.0 }
  0xe6   :  { %v996_v16 = vpop.f32.mrf.mxu2  ;;  %1365 = vmatpush.bf16.msra.mxu2 %v2155_v6 }
  0xe7   :  { %v997_v20 = vadd.f32 %v996_v16, %v983_v15  ;;  %v1010_v21 = vpop.f32.mrf.mxu3 }
  0xe9   :  { %v1011_v23 = vadd.f32 %v1010_v21, %v997_v20 }
  0xea   :  { %1366 = vmatpush.bf16.msra.mxu2 %v2154_v7 }
  0xeb   :  { %v1127_v25 = vmax.f32 %v1011_v23, 0.0 }
  0xed   :  { %v1129_v26 = vpack.c.bf16 %v1127_v25, %v1125_v24  ;;  %v2171_v25 = vld [vmem:[%s2447_s6] ss:$0 sm:$0xff] }
  0xee   :  { %1367 = vmatpush.bf16.msra.mxu2 %v2153_v8 }
  0xef   :  { %1271 = vmatmul.bf16.vlgmr.msra.gmra.mxu0 %v1129_v26 }
  0xf2   :  { %1368 = vmatpush.bf16.msra.mxu2 %v2152_v9 }
  0xf6   :  { %v1022_v31 = vpop.f32.mrf.mxu0  ;;  %1369 = vmatpush.bf16.msra.mxu2 %v2151_v11 }
  0xf7   :  { %v1036_v33 = vpop.f32.mrf.mxu1  ;;  %v1023_v38 = vadd.f32 %v1022_v31, %v258_v34 }
  0xf9   :  { %v1037_v42 = vadd.f32 %v1036_v33, %v1023_v38 }
  0xfe   :  { %v1050_v36 = vpop.f32.mrf.mxu2  ;;  %v1024_v40 = vpop.f32.mrf.mxu0 }
  0xff   :  { %v1064_v37 = vpop.f32.mrf.mxu3  ;;  %v1038_v41 = vpop.f32.mrf.mxu1  ;;  %v1025_v45 = vadd.f32 %v1024_v40, %v258_v34  ;;  %v1051_v48 = vadd.f32 %v1050_v36, %v1037_v42 }
 0x101   :  { %v1039_v1 = vadd.f32 %v1038_v41, %v1025_v45  ;;  %v1065_v52 = vadd.f32 %v1064_v37, %v1051_v48 }
 0x106   :  { %v1052_v46 = vpop.f32.mrf.mxu2 }
 0x107   :  { %v1066_v49 = vpop.f32.mrf.mxu3  ;;  %v1053_v53 = vadd.f32 %v1052_v46, %v1039_v1 }
 0x109   :  { %v1067_v58 = vadd.f32 %v1066_v49, %v1053_v53 }
 0x116   :  { %v1078_v50 = vpop.f32.mrf.mxu0 }
 0x117   :  { %v1092_v51 = vpop.f32.mrf.mxu1  ;;  %v1079_v39 = vadd.f32 %v1078_v50, %v1065_v52 }
 0x119   :  { %v1093_v17 = vadd.f32 %v1092_v51, %v1079_v39 }
 0x11e   :  { %v1106_v43 = vpop.f32.mrf.mxu2  ;;  %v1080_v47 = vpop.f32.mrf.mxu0 }
 0x11f   :  { %v1120_v44 = vpop.f32.mrf.mxu3  ;;  %v1081_v54 = vadd.f32 %v1080_v47, %v1067_v58  ;;  %v1107_v10 = vadd.f32 %v1106_v43, %v1093_v17  ;;  %v1094_v55 = vpop.f32.mrf.mxu1 }
 0x121   :  { %v1095_v56 = vadd.f32 %v1094_v55, %v1081_v54  ;;  %v1121_v59 = vadd.f32 %v1120_v44, %v1107_v10 }
 0x123   :  { %v1126_v63 = vmax.f32 %v1121_v59, 0.0 }
 0x126   :  { %v1108_v57 = vpop.f32.mrf.mxu2 }
 0x127   :  { %v1109_v60 = vadd.f32 %v1108_v57, %v1095_v56  ;;  %v1122_v61 = vpop.f32.mrf.mxu3 }
 0x129   :  { %v1123_v62 = vadd.f32 %v1122_v61, %v1109_v60 }
 0x12b   :  { %v1128_v0 = vmax.f32 %v1123_v62, 0.0 }
 0x12d   :  { %v1130_v2 = vpack.c.bf16 %v1128_v0, %v1126_v63 }
 0x12f   :  { %1285 = vmatmul.bf16.vlgmr.msra.gmra.mxu1 %v1130_v2 }
 0x16c   :  { %v1272_v12 = vpop.f32.mrf.mxu0 }
 0x16d   :  { %v1273_v16 = vadd.f32 %v2170_v14, %v1272_v12 }
 0x174   :  { %v1274_v15 = vpop.f32.mrf.mxu0 }
 0x175   :  { %v1275_v18 = vadd.f32 %v2170_v14, %v1274_v15 }
 0x1ac   :  { %v1286_v13 = vpop.f32.mrf.mxu1 }
 0x1ad   :  { %v1287_v19 = vadd.f32 %v1286_v13, %v1273_v16 }
 0x1af   :  { %v1291_v22 = vmax.f32 %v1287_v19, 0.0 }
 0x1b4   :  { %v1288_v20 = vpop.f32.mrf.mxu1 }
 0x1b5   :  { %v1289_v21 = vadd.f32 %v1288_v20, %v1275_v18 }
 0x1b7   :  { %v1292_v23 = vmax.f32 %v1289_v21, 0.0 }
 0x1b9   :  { %v1293_v24 = vpack.c.bf16 %v1292_v23, %v1291_v22 }
 0x1bb   :  { %1370 = vmatmul.bf16.vlgmr.msra.gmra.mxu2 %v1293_v24 }
 0x23e   :  { %v1371_v26 = vpop.f32.mrf.mxu2 }
 0x23f   :  { %v1372_v27 = vadd.f32 %v2171_v25, %v1371_v26 }
 0x241   :  { %1376 = vst [vmem:[#allocation11] sm:$0xff] %v1372_v27 }
 0x246   :  { %v1373_v28 = vpop.f32.mrf.mxu2 }
 0x247   :  { %v1374_v29 = vadd.f32 %v2171_v25, %v1373_v28 }
 0x249   :  { %1377 = vst [vmem:[#allocation11 + $0x8] sm:$0xff] %v1374_v29 }
 0x24a   :  { %1390 = dma.vmem_to_hbm [thread:$0]  %s1383_s10, 256, %s1385_s12, [#allocation4], %s2325_s29, %s2325_s29, %s2326_s30  }
 0x24b   :  { %2322 = dma.done.wait [#allocation4], 256  }
 0x24c   :  { %2323 = vsyncadd [#allocation4], 4294967040 }
 0x24d   :  { %1395 = vsyncpa [#allocation3], 1 }
 0x24e   :  { %1396 = vsyncpa [#allocation6], 1 }
 0x24f   :  { %1397 = vsyncpa [#allocation9], 1 }
 0x250   :  { %1398 = vsyncpa [#allocation4], 1 }

// kernel: tpu_custom_call.1
= control target key start
LH: loop header
LB: loop body
LE: loop exit
PB: predicated region body
PF: predicated region fallthrough
CT: control target
= control target key end

     0   :  { %12 = vsyncpa [#allocation3], 0  ;;  %s2441_s0 = inlined_call_operand.hbm [shape: f32[16,1024], index: 0, kind: input, shape index: {}]   ;;  %s2442_s1 = inlined_call_operand.hbm [shape: bf16[1024,256], index: 1, kind: input, shape index: {}]   ;;  %s2443_s2 = inlined_call_operand.hbm [shape: f32[1,256], index: 2, kind: input, shape index: {}]   ;;  %s2444_s3 = inlined_call_operand.hbm [shape: bf16[256,128], index: 3, kind: input, shape index: {}]   ;;  %s2445_s4 = inlined_call_operand.vmem [shape: f32[1,128], index: 4, kind: input, shape index: {}]   ;;  %s2446_s5 = inlined_call_operand.hbm [shape: bf16[128,128], index: 5, kind: input, shape index: {}]   ;;  %s2447_s6 = inlined_call_operand.vmem [shape: f32[1,128], index: 6, kind: input, shape index: {}]   ;;  %s2448_s7 = inlined_call_operand.hbm [shape: f32[16,128], index: 7, kind: output, shape index: {}]  }
   0x1   :  { %13 = vsyncpa [#allocation6], 0 }
   0x2   :  { %14 = vsyncpa [#allocation9], 0  ;;  %s33_s26 = sshll.u32 %s2442_s1, 4  ;;  %s34_s26 = int_to_ptr.hbm [resolvable:$true] %s33_s26 }
   0x3   :  { %15 = vsyncpa [#allocation4], 0  ;;  %s2324_s27 = smov [#allocation5]   ;;  %s2325_s29 = smov 128  }
   0x4   :  { %s35_s28 = sshll.u32 %s2324_s27, 4  ;;  %s2326_s30 = smov 8   ;;  %s36_s28 = int_to_ptr.vmem [resolvable:$true] %s35_s28 }
   0x5   :  { %41 = dma.hbm_to_vmem [thread:$0]  %s34_s26, 16384, %s36_s28, [#allocation6], %s2325_s29, %s2325_s29, %s2326_s30  }
   0x6   :  { %s57_s10 = sshll.u32 %s2444_s3, 4  ;;  %s2327_s11 = smov [#allocation8]   ;;  %s58_s10 = int_to_ptr.hbm [resolvable:$true] %s57_s10 }
   0x7   :  { %s59_s12 = sshll.u32 %s2327_s11, 4  ;;  %s2328_s1 = smov 64   ;;  %s60_s12 = int_to_ptr.vmem [resolvable:$true] %s59_s12 }
   0x8   :  { %s2329_s13 = smov 4   ;;  %s20_s16 = sshll.u32 %s2441_s0, 4  ;;  %s21_s16 = int_to_ptr.hbm [resolvable:$true] %s20_s16 }
   0x9   :  { %65 = dma.hbm_to_vmem [thread:$0]  %s58_s10, 2048, %s60_s12, [#allocation9], %s2328_s1, %s2328_s1, %s2329_s13  }
   0xa   :  { %s2330_s17 = smov [#allocation2]   ;;  %s2331_s19 = smov 1024  }
   0xb   :  { %s22_s18 = sshll.u32 %s2330_s17, 4  ;;  %s47_s3 = sshll.u32 %s2443_s2, 4  ;;  %s23_s18 = int_to_ptr.vmem [resolvable:$true] %s22_s18  ;;  %s48_s3 = int_to_ptr.hbm [resolvable:$true] %s47_s3 }
   0xc   :  { %28 = dma.hbm_to_vmem [thread:$0]  %s21_s16, 2048, %s23_s18, [#allocation3], %s2331_s19, %s2331_s19, %s2328_s1  }
   0xd   :  { %s2332_s22 = smov [#allocation7]   ;;  %s72_s26 = sshll.u32 %s2446_s5, 4  ;;  %s73_s26 = int_to_ptr.hbm [resolvable:$true] %s72_s26 }
   0xe   :  { %s49_s23 = sshll.u32 %s2332_s22, 4  ;;  %s2333_s0 = smov [#allocation10]   ;;  %s50_s23 = int_to_ptr.vmem [resolvable:$true] %s49_s23 }
   0xf   :  { %52 = dma.hbm_to_vmem [thread:$0]  %s48_s3, 32, %s50_s23, [#allocation6]  }
  0x10   :  { %s74_s27 = sshll.u32 %s2333_s0, 4  ;;  %s75_s27 = int_to_ptr.vmem [resolvable:$true] %s74_s27 }
  0x11   :  { %80 = dma.hbm_to_vmem [thread:$0]  %s73_s26, 1024, %s75_s27, [#allocation9], %s2328_s1, %s2328_s1, %s2329_s13  }
  0x12   :  { %2316 = dma.done.wait [#allocation3], 2048  }
  0x13   :  { %2317 = vsyncadd [#allocation3], 4294965248 }
  0x14   :  { %2318 = dma.done.wait [#allocation6], 16416  }
  0x15   :  { %2319 = vsyncadd [#allocation6], 4294950880 }
  0x16   :  { %2320 = dma.done.wait [#allocation9], 3072  }
  0x17   :  { %2321 = vsyncadd [#allocation9], 4294964224  ;;  %v1457_v0 = vld [vmem:[#allocation5 + $0x70] sm:$0xf]  ;;  %v2022_v1 = vld [vmem:[#allocation5 + $0x74] sm:$0xf0] }
  0x18   :  { %v1521_v2 = vld [vmem:[#allocation5 + $0xf0] sm:$0xf]  ;;  %v1458_v3 = vor.u32 %v2022_v1, %v1457_v0  ;;  %v2038_v4 = vld [vmem:[#allocation5 + $0xf4] sm:$0xf0]  ;;  %v1449_v11 = vld [vmem:[#allocation5 + $0x60] sm:$0xf] }
  0x19   :  { %v1585_v5 = vld [vmem:[#allocation5 + $0x170] sm:$0xf]  ;;  %v2054_v6 = vld [vmem:[#allocation5 + $0x174] sm:$0xf0]  ;;  %v1522_v7 = vor.u32 %v2038_v4, %v1521_v2  ;;  %v2020_v13 = vld [vmem:[#allocation5 + $0x64] sm:$0xf0] }
  0x1a   :  { %v1586_v8 = vor.u32 %v2054_v6, %v1585_v5  ;;  %v1649_v9 = vld [vmem:[#allocation5 + $0x1f0] sm:$0xf]  ;;  %v2070_v10 = vld [vmem:[#allocation5 + $0x1f4] sm:$0xf0]  ;;  %901 = vmatpush.bf16.msra.mxu0 %v1458_v3  ;;  %v1513_v14 = vld [vmem:[#allocation5 + $0xe0] sm:$0xf]  ;;  %v1450_v16 = vor.u32 %v2020_v13, %v1449_v11 }
  0x1b   :  { %v1650_v12 = vor.u32 %v2070_v10, %v1649_v9  ;;  %v2036_v15 = vld [vmem:[#allocation5 + $0xe4] sm:$0xf0]  ;;  %915 = vmatpush.bf16.msra.mxu1 %v1522_v7  ;;  %v1577_v18 = vld [vmem:[#allocation5 + $0x160] sm:$0xf]  ;;  %v1441_v23 = vld [vmem:[#allocation5 + $0x50] sm:$0xf] }
  0x1c   :  { %929 = vmatpush.bf16.msra.mxu2 %v1586_v8  ;;  %v1514_v17 = vor.u32 %v2036_v15, %v1513_v14  ;;  %v2052_v19 = vld [vmem:[#allocation5 + $0x164] sm:$0xf0]  ;;  %v1641_v20 = vld [vmem:[#allocation5 + $0x1e0] sm:$0xf]  ;;  %v2018_v24 = vld [vmem:[#allocation5 + $0x54] sm:$0xf0] }
  0x1d   :  { %943 = vmatpush.bf16.msra.mxu3 %v1650_v12  ;;  %v1578_v21 = vor.u32 %v2052_v19, %v1577_v18  ;;  %v2068_v22 = vld [vmem:[#allocation5 + $0x1e4] sm:$0xf0]  ;;  %v1505_v26 = vld [vmem:[#allocation5 + $0xd0] sm:$0xf]  ;;  %v2034_v27 = vld [vmem:[#allocation5 + $0xd4] sm:$0xf0]  ;;  %v1442_v29 = vor.u32 %v2018_v24, %v1441_v23 }
  0x1e   :  { %v1642_v25 = vor.u32 %v2068_v22, %v1641_v20  ;;  %v1569_v28 = vld [vmem:[#allocation5 + $0x150] sm:$0xf]  ;;  %902 = vmatpush.bf16.msra.mxu0 %v1450_v16  ;;  %v2050_v30 = vld [vmem:[#allocation5 + $0x154] sm:$0xf0]  ;;  %v1506_v33 = vor.u32 %v2034_v27, %v1505_v26  ;;  %v1433_v35 = vld [vmem:[#allocation5 + $0x40] sm:$0xf] }
  0x1f   :  { %v1633_v31 = vld [vmem:[#allocation5 + $0x1d0] sm:$0xf]  ;;  %v2066_v32 = vld [vmem:[#allocation5 + $0x1d4] sm:$0xf0]  ;;  %916 = vmatpush.bf16.msra.mxu1 %v1514_v17  ;;  %v1570_v34 = vor.u32 %v2050_v30, %v1569_v28  ;;  %v2016_v36 = vld [vmem:[#allocation5 + $0x44] sm:$0xf0] }
  0x20   :  { %930 = vmatpush.bf16.msra.mxu2 %v1578_v21  ;;  %v1497_v37 = vld [vmem:[#allocation5 + $0xc0] sm:$0xf]  ;;  %v1634_v38 = vor.u32 %v2066_v32, %v1633_v31  ;;  %v2032_v39 = vld [vmem:[#allocation5 + $0xc4] sm:$0xf0]  ;;  %v1434_v44 = vor.u32 %v2016_v36, %v1433_v35  ;;  %v1425_v47 = vld [vmem:[#allocation5 + $0x30] sm:$0xf] }
  0x21   :  { %944 = vmatpush.bf16.msra.mxu3 %v1642_v25  ;;  %v1561_v40 = vld [vmem:[#allocation5 + $0x140] sm:$0xf]  ;;  %v2048_v41 = vld [vmem:[#allocation5 + $0x144] sm:$0xf0]  ;;  %v1498_v45 = vor.u32 %v2032_v39, %v1497_v37  ;;  %v2014_v48 = vld [vmem:[#allocation5 + $0x34] sm:$0xf0] }
  0x22   :  { %v1625_v42 = vld [vmem:[#allocation5 + $0x1c0] sm:$0xf]  ;;  %v2064_v43 = vld [vmem:[#allocation5 + $0x1c4] sm:$0xf0]  ;;  %903 = vmatpush.bf16.msra.mxu0 %v1442_v29  ;;  %v1562_v46 = vor.u32 %v2048_v41, %v1561_v40  ;;  %v1489_v49 = vld [vmem:[#allocation5 + $0xb0] sm:$0xf]  ;;  %v1426_v56 = vor.u32 %v2014_v48, %v1425_v47 }
  0x23   :  { %917 = vmatpush.bf16.msra.mxu1 %v1506_v33  ;;  %v1626_v50 = vor.u32 %v2064_v43, %v1625_v42  ;;  %v2030_v51 = vld [vmem:[#allocation5 + $0xb4] sm:$0xf0]  ;;  %v1553_v52 = vld [vmem:[#allocation5 + $0x130] sm:$0xf]  ;;  %v1417_v59 = vld [vmem:[#allocation5 + $0x20] sm:$0xf] }
  0x24   :  { %931 = vmatpush.bf16.msra.mxu2 %v1570_v34  ;;  %v2046_v53 = vld [vmem:[#allocation5 + $0x134] sm:$0xf0]  ;;  %v1617_v54 = vld [vmem:[#allocation5 + $0x1b0] sm:$0xf]  ;;  %v1490_v57 = vor.u32 %v2030_v51, %v1489_v49  ;;  %v2012_v60 = vld [vmem:[#allocation5 + $0x24] sm:$0xf0] }
  0x25   :  { %945 = vmatpush.bf16.msra.mxu3 %v1634_v38  ;;  %v2062_v55 = vld [vmem:[#allocation5 + $0x1b4] sm:$0xf0]  ;;  %v1554_v58 = vor.u32 %v2046_v53, %v1553_v52  ;;  %v1481_v61 = vld [vmem:[#allocation5 + $0xa0] sm:$0xf]  ;;  %v2028_v63 = vld [vmem:[#allocation5 + $0xa4] sm:$0xf0]  ;;  %v1418_v4 = vor.u32 %v2012_v60, %v1417_v59 }
  0x26   :  { %904 = vmatpush.bf16.msra.mxu0 %v1434_v44  ;;  %v1618_v62 = vor.u32 %v2062_v55, %v1617_v54  ;;  %v1545_v0 = vld [vmem:[#allocation5 + $0x120] sm:$0xf]  ;;  %v2044_v1 = vld [vmem:[#allocation5 + $0x124] sm:$0xf0]  ;;  %v1482_v5 = vor.u32 %v2028_v63, %v1481_v61  ;;  %v1409_v7 = vld [vmem:[#allocation5 + $0x10] sm:$0xf] }
  0x27   :  { %918 = vmatpush.bf16.msra.mxu1 %v1498_v45  ;;  %v1609_v2 = vld [vmem:[#allocation5 + $0x1a0] sm:$0xf]  ;;  %v2060_v3 = vld [vmem:[#allocation5 + $0x1a4] sm:$0xf0]  ;;  %v1546_v6 = vor.u32 %v2044_v1, %v1545_v0  ;;  %v2010_v8 = vld [vmem:[#allocation5 + $0x14] sm:$0xf0] }
  0x28   :  { %932 = vmatpush.bf16.msra.mxu2 %v1562_v46  ;;  %v1473_v9 = vld [vmem:[#allocation5 + $0x90] sm:$0xf]  ;;  %v1610_v10 = vor.u32 %v2060_v3, %v1609_v2  ;;  %v2026_v11 = vld [vmem:[#allocation5 + $0x94] sm:$0xf0]  ;;  %v1410_v16 = vor.u32 %v2010_v8, %v1409_v7  ;;  %v1401_v17 = vld [vmem:[#allocation5] sm:$0xf] }
  0x29   :  { %946 = vmatpush.bf16.msra.mxu3 %v1626_v50  ;;  %v1537_v12 = vld [vmem:[#allocation5 + $0x110] sm:$0xf]  ;;  %v2042_v13 = vld [vmem:[#allocation5 + $0x114] sm:$0xf0]  ;;  %v2008_v18 = vld [vmem:[#allocation5 + $0x4] sm:$0xf0]  ;;  %v1474_v19 = vor.u32 %v2026_v11, %v1473_v9 }
  0x2a   :  { %905 = vmatpush.bf16.msra.mxu0 %v1426_v56  ;;  %v1601_v14 = vld [vmem:[#allocation5 + $0x190] sm:$0xf]  ;;  %v2058_v15 = vld [vmem:[#allocation5 + $0x194] sm:$0xf0]  ;;  %v1538_v20 = vor.u32 %v2042_v13, %v1537_v12  ;;  %v1465_v21 = vld [vmem:[#allocation5 + $0x80] sm:$0xf]  ;;  %v1402_v31 = vor.u32 %v2008_v18, %v1401_v17 }
  0x2b   :  { %919 = vmatpush.bf16.msra.mxu1 %v1490_v57  ;;  %v2024_v22 = vld [vmem:[#allocation5 + $0x84] sm:$0xf0]  ;;  %v1529_v23 = vld [vmem:[#allocation5 + $0x100] sm:$0xf]  ;;  %v1602_v24 = vor.u32 %v2058_v15, %v1601_v14  ;;  %v1713_v28 = vld [vmem:[#allocation5 + $0x270] sm:$0xf] }
  0x2c   :  { %933 = vmatpush.bf16.msra.mxu2 %v1554_v58  ;;  %v2040_v25 = vld [vmem:[#allocation5 + $0x104] sm:$0xf0]  ;;  %v1593_v26 = vld [vmem:[#allocation5 + $0x180] sm:$0xf]  ;;  %v2086_v29 = vld [vmem:[#allocation5 + $0x274] sm:$0xf0]  ;;  %v1466_v35 = vor.u32 %v2024_v22, %v1465_v21 }
  0x2d   :  { %947 = vmatpush.bf16.msra.mxu3 %v1618_v62  ;;  %v2056_v27 = vld [vmem:[#allocation5 + $0x184] sm:$0xf0]  ;;  %v1777_v30 = vld [vmem:[#allocation5 + $0x2f0] sm:$0xf]  ;;  %v2102_v32 = vld [vmem:[#allocation5 + $0x2f4] sm:$0xf0]  ;;  %v1530_v36 = vor.u32 %v2040_v25, %v1529_v23  ;;  %v1714_v40 = vor.u32 %v2086_v29, %v1713_v28 }
  0x2e   :  { %906 = vmatpush.bf16.msra.mxu0 %v1418_v4  ;;  %v1841_v33 = vld [vmem:[#allocation5 + $0x370] sm:$0xf]  ;;  %v2118_v34 = vld [vmem:[#allocation5 + $0x374] sm:$0xf0]  ;;  %v1594_v39 = vor.u32 %v2056_v27, %v1593_v26  ;;  %v1705_v41 = vld [vmem:[#allocation5 + $0x260] sm:$0xf]  ;;  %v1778_v43 = vor.u32 %v2102_v32, %v1777_v30 }
  0x2f   :  { %920 = vmatpush.bf16.msra.mxu1 %v1482_v5  ;;  %v1905_v37 = vld [vmem:[#allocation5 + $0x3f0] sm:$0xf]  ;;  %v2134_v38 = vld [vmem:[#allocation5 + $0x3f4] sm:$0xf0]  ;;  %v2084_v42 = vld [vmem:[#allocation5 + $0x264] sm:$0xf0]  ;;  %v1842_v44 = vor.u32 %v2118_v34, %v1841_v33 }
  0x30   :  { %934 = vmatpush.bf16.msra.mxu2 %v1546_v6  ;;  %v1769_v45 = vld [vmem:[#allocation5 + $0x2e0] sm:$0xf]  ;;  %v2100_v46 = vld [vmem:[#allocation5 + $0x2e4] sm:$0xf0]  ;;  %v1906_v48 = vor.u32 %v2134_v38, %v1905_v37  ;;  %v105_v54 = vld [vmem:[#allocation2 + $0x10] sm:$0xff]  ;;  %v1706_v55 = vor.u32 %v2084_v42, %v1705_v41  ;;  %s2334_s9 = smov [#allocation11]  }
  0x31   :  { %948 = vmatpush.bf16.msra.mxu3 %v1610_v10  ;;  %v1833_v47 = vld [vmem:[#allocation5 + $0x360] sm:$0xf]  ;;  %v2116_v49 = vld [vmem:[#allocation5 + $0x364] sm:$0xf0]  ;;  %v1697_v56 = vld [vmem:[#allocation5 + $0x250] sm:$0xf]  ;;  %v1770_v60 = vor.u32 %v2100_v46, %v1769_v45 }
  0x32   :  { %907 = vmatpush.bf16.msra.mxu0 %v1410_v16  ;;  %v1897_v50 = vld [vmem:[#allocation5 + $0x3e0] sm:$0xf]  ;;  %v2132_v51 = vld [vmem:[#allocation5 + $0x3e4] sm:$0xf0]  ;;  %v2082_v57 = vld [vmem:[#allocation5 + $0x254] sm:$0xf0]  ;;  %v1834_v61 = vor.u32 %v2116_v49, %v1833_v47 }
  0x33   :  { %921 = vmatpush.bf16.msra.mxu1 %v1474_v19  ;;  %v103_v52 = vld [vmem:[#allocation2] sm:$0xff]  ;;  %v113_v59 = vld [vmem:[#allocation2 + $0x50] sm:$0xff]  ;;  %v2098_v63 = vld [vmem:[#allocation5 + $0x2d4] sm:$0xf0]  ;;  %v1898_v2 = vor.u32 %v2132_v51, %v1897_v50  ;;  %v1698_v9 = vor.u32 %v2082_v57, %v1697_v56  ;;  %s1382_s10 = sshll.u32 %s2334_s9, 4  ;;  %s1384_s12 = sshll.u32 %s2448_s7, 4  ;;  %s1383_s10 = int_to_ptr.vmem [resolvable:$true] %s1382_s10  ;;  %s1385_s12 = int_to_ptr.hbm [resolvable:$true] %s1384_s12 }
  0x34   :  { %935 = vmatpush.bf16.msra.mxu2 %v1538_v20  ;;  %v111_v53 = vld [vmem:[#allocation2 + $0x40] sm:$0xff]  ;;  %v1761_v62 = vld [vmem:[#allocation5 + $0x2d0] sm:$0xf]  ;;  %v2395_v1 = vpack.c.bf16 %v113_v59, %v105_v54  ;;  %v2114_v3 = vld [vmem:[#allocation5 + $0x354] sm:$0xf0] }
  0x35   :  { %949 = vmatpush.bf16.msra.mxu3 %v1602_v24  ;;  %v2393_v58 = vpack.c.bf16 %v111_v53, %v103_v52  ;;  %v1825_v0 = vld [vmem:[#allocation5 + $0x350] sm:$0xf]  ;;  %v2130_v5 = vld [vmem:[#allocation5 + $0x3d4] sm:$0xf0]  ;;  %v104_v6 = vld [vmem:[#allocation2 + $0x8] sm:$0xff]  ;;  %v1762_v12 = vor.u32 %v2098_v63, %v1761_v62 }
  0x36   :  { %908 = vmatpush.bf16.msra.mxu0 %v1402_v31  ;;  %v1889_v4 = vld [vmem:[#allocation5 + $0x3d0] sm:$0xf]  ;;  %v112_v7 = vld [vmem:[#allocation2 + $0x48] sm:$0xff]  ;;  %v106_v8 = vld [vmem:[#allocation2 + $0x18] sm:$0xff]  ;;  %v1826_v13 = vor.u32 %v2114_v3, %v1825_v0 }
  0x37   :  { %922 = vmatpush.bf16.msra.mxu1 %v1466_v35  ;;  %v2399_v10 = vpack.c.bf16 %v112_v7, %v104_v6  ;;  %v114_v11 = vld [vmem:[#allocation2 + $0x58] sm:$0xff]  ;;  %v1689_v14 = vld [vmem:[#allocation5 + $0x240] sm:$0xf]  ;;  %v2080_v15 = vld [vmem:[#allocation5 + $0x244] sm:$0xf0]  ;;  %v1890_v18 = vor.u32 %v2130_v5, %v1889_v4 }
  0x38   :  { %936 = vmatpush.bf16.msra.mxu2 %v1530_v36  ;;  %v1753_v16 = vld [vmem:[#allocation5 + $0x2c0] sm:$0xf]  ;;  %v2401_v17 = vpack.c.bf16 %v114_v11, %v106_v8  ;;  %v2096_v19 = vld [vmem:[#allocation5 + $0x2c4] sm:$0xf0]  ;;  %v1690_v24 = vor.u32 %v2080_v15, %v1689_v14  ;;  %v1681_v27 = vld [vmem:[#allocation5 + $0x230] sm:$0xf] }
  0x39   :  { %950 = vmatpush.bf16.msra.mxu3 %v1594_v39  ;;  %909 = vmatmul.bf16.vlgmr.msra.gmra.mxu0 %v2393_v58  ;;  %v1817_v20 = vld [vmem:[#allocation5 + $0x340] sm:$0xf]  ;;  %v2112_v21 = vld [vmem:[#allocation5 + $0x344] sm:$0xf0]  ;;  %v1754_v25 = vor.u32 %v2096_v19, %v1753_v16  ;;  %v2078_v28 = vld [vmem:[#allocation5 + $0x234] sm:$0xf0] }
  0x3a   :  { %957 = vmatpush.bf16.msrb.mxu0 %v1714_v40  ;;  %923 = vmatmul.bf16.vlgmr.msra.gmra.mxu1 %v2399_v10  ;;  %v1881_v22 = vld [vmem:[#allocation5 + $0x3c0] sm:$0xf]  ;;  %v2128_v23 = vld [vmem:[#allocation5 + $0x3c4] sm:$0xf0]  ;;  %v1818_v26 = vor.u32 %v2112_v21, %v1817_v20  ;;  %v1745_v29 = vld [vmem:[#allocation5 + $0x2b0] sm:$0xf]  ;;  %v1682_v36 = vor.u32 %v2078_v28, %v1681_v27 }
  0x3b   :  { %971 = vmatpush.bf16.msrb.mxu1 %v1778_v43  ;;  %937 = vmatmul.bf16.vlgmr.msra.gmra.mxu2 %v2395_v1  ;;  %v1882_v30 = vor.u32 %v2128_v23, %v1881_v22  ;;  %v2094_v31 = vld [vmem:[#allocation5 + $0x2b4] sm:$0xf0]  ;;  %v1809_v32 = vld [vmem:[#allocation5 + $0x330] sm:$0xf]  ;;  %v1673_v39 = vld [vmem:[#allocation5 + $0x220] sm:$0xf] }
  0x3c   :  { %985 = vmatpush.bf16.msrb.mxu2 %v1842_v44  ;;  %951 = vmatmul.bf16.vlgmr.msra.gmra.mxu3 %v2401_v17  ;;  %v2110_v33 = vld [vmem:[#allocation5 + $0x334] sm:$0xf0]  ;;  %v1873_v34 = vld [vmem:[#allocation5 + $0x3b0] sm:$0xf]  ;;  %v1746_v37 = vor.u32 %v2094_v31, %v1745_v29  ;;  %v2076_v40 = vld [vmem:[#allocation5 + $0x224] sm:$0xf0] }
  0x3d   :  { %999 = vmatpush.bf16.msrb.mxu3 %v1906_v48  ;;  %v2126_v35 = vld [vmem:[#allocation5 + $0x3b4] sm:$0xf0]  ;;  %v1810_v38 = vor.u32 %v2110_v33, %v1809_v32  ;;  %v1737_v41 = vld [vmem:[#allocation5 + $0x2a0] sm:$0xf]  ;;  %v2092_v43 = vld [vmem:[#allocation5 + $0x2a4] sm:$0xf0]  ;;  %v1674_v48 = vor.u32 %v2076_v40, %v1673_v39 }
  0x3e   :  { %958 = vmatpush.bf16.msrb.mxu0 %v1706_v55  ;;  %v1874_v42 = vor.u32 %v2126_v35, %v1873_v34  ;;  %v1801_v44 = vld [vmem:[#allocation5 + $0x320] sm:$0xf]  ;;  %v2108_v45 = vld [vmem:[#allocation5 + $0x324] sm:$0xf0]  ;;  %v1665_v49 = vld [vmem:[#allocation5 + $0x210] sm:$0xf]  ;;  %v1738_v50 = vor.u32 %v2092_v43, %v1737_v41 }
  0x3f   :  { %972 = vmatpush.bf16.msrb.mxu1 %v1770_v60  ;;  %v1865_v46 = vld [vmem:[#allocation5 + $0x3a0] sm:$0xf]  ;;  %v2124_v47 = vld [vmem:[#allocation5 + $0x3a4] sm:$0xf0]  ;;  %v1802_v51 = vor.u32 %v2108_v45, %v1801_v44  ;;  %v2074_v52 = vld [vmem:[#allocation5 + $0x214] sm:$0xf0] }
  0x40   :  { %986 = vmatpush.bf16.msrb.mxu2 %v1834_v61  ;;  %v1729_v53 = vld [vmem:[#allocation5 + $0x290] sm:$0xf]  ;;  %v2090_v54 = vld [vmem:[#allocation5 + $0x294] sm:$0xf0]  ;;  %v1866_v55 = vor.u32 %v2124_v47, %v1865_v46  ;;  %v1657_v61 = vld [vmem:[#allocation5 + $0x200] sm:$0xf]  ;;  %v1666_v63 = vor.u32 %v2074_v52, %v1665_v49 }
  0x41   :  { %1000 = vmatpush.bf16.msrb.mxu3 %v1898_v2  ;;  %v1793_v56 = vld [vmem:[#allocation5 + $0x310] sm:$0xf]  ;;  %v2106_v57 = vld [vmem:[#allocation5 + $0x314] sm:$0xf0]  ;;  %v2072_v62 = vld [vmem:[#allocation5 + $0x204] sm:$0xf0]  ;;  %v1730_v5 = vor.u32 %v2090_v54, %v1729_v53 }
  0x42   :  { %959 = vmatpush.bf16.msrb.mxu0 %v1698_v9  ;;  %v1857_v59 = vld [vmem:[#allocation5 + $0x390] sm:$0xf]  ;;  %v2122_v60 = vld [vmem:[#allocation5 + $0x394] sm:$0xf0]  ;;  %v1721_v0 = vld [vmem:[#allocation5 + $0x280] sm:$0xf]  ;;  %v1794_v6 = vor.u32 %v2106_v57, %v1793_v56  ;;  %v1658_v19 = vor.u32 %v2072_v62, %v1657_v61 }
  0x43   :  { %973 = vmatpush.bf16.msrb.mxu1 %v1762_v12  ;;  %v2088_v2 = vld [vmem:[#allocation5 + $0x284] sm:$0xf0]  ;;  %v1785_v3 = vld [vmem:[#allocation5 + $0x300] sm:$0xf]  ;;  %v2021_v9 = vld [vmem:[#allocation5 + $0x74] sm:$0xf]  ;;  %v1858_v11 = vor.u32 %v2122_v60, %v1857_v59 }
  0x44   :  { %987 = vmatpush.bf16.msrb.mxu2 %v1826_v13  ;;  %v2104_v4 = vld [vmem:[#allocation5 + $0x304] sm:$0xf0]  ;;  %v1849_v7 = vld [vmem:[#allocation5 + $0x380] sm:$0xf]  ;;  %v1459_v12 = vld [vmem:[#allocation5 + $0x78] sm:$0xf0]  ;;  %v1722_v23 = vor.u32 %v2088_v2, %v1721_v0 }
  0x45   :  { %1001 = vmatpush.bf16.msrb.mxu3 %v1890_v18  ;;  %v2120_v8 = vld [vmem:[#allocation5 + $0x384] sm:$0xf0]  ;;  %v2037_v13 = vld [vmem:[#allocation5 + $0xf4] sm:$0xf]  ;;  %v1523_v14 = vld [vmem:[#allocation5 + $0xf8] sm:$0xf0]  ;;  %v1462_v29 = vor.u32 %v2021_v9, %v1459_v12 }
  0x46   :  { %960 = vmatpush.bf16.msrb.mxu0 %v1690_v24  ;;  %v2053_v15 = vld [vmem:[#allocation5 + $0x174] sm:$0xf]  ;;  %v1587_v16 = vld [vmem:[#allocation5 + $0x178] sm:$0xf0]  ;;  %v107_v21 = vld [vmem:[#allocation2 + $0x20] sm:$0xff]  ;;  %v1786_v24 = vor.u32 %v2104_v4, %v1785_v3  ;;  %v1850_v28 = vor.u32 %v2120_v8, %v1849_v7  ;;  %v1526_v33 = vor.u32 %v2037_v13, %v1523_v14 }
  0x47   :  { %974 = vmatpush.bf16.msrb.mxu1 %v1754_v25  ;;  %v2069_v18 = vld [vmem:[#allocation5 + $0x1f4] sm:$0xf]  ;;  %v1651_v20 = vld [vmem:[#allocation5 + $0x1f8] sm:$0xf0]  ;;  %v115_v22 = vld [vmem:[#allocation2 + $0x60] sm:$0xff]  ;;  %v1590_v34 = vor.u32 %v2053_v15, %v1587_v16 }
  0x48   :  { %988 = vmatpush.bf16.msrb.mxu2 %v1818_v26  ;;  %v109_v25 = vld [vmem:[#allocation2 + $0x30] sm:$0xff]  ;;  %v108_v27 = vld [vmem:[#allocation2 + $0x28] sm:$0xff]  ;;  %v110_v31 = vld [vmem:[#allocation2 + $0x38] sm:$0xff]  ;;  %v2405_v39 = vpack.c.bf16 %v115_v22, %v107_v21 }
  0x49   :  { %1002 = vmatpush.bf16.msrb.mxu3 %v1882_v30  ;;  %v117_v26 = vld [vmem:[#allocation2 + $0x70] sm:$0xff]  ;;  %v116_v30 = vld [vmem:[#allocation2 + $0x68] sm:$0xff]  ;;  %v118_v32 = vld [vmem:[#allocation2 + $0x78] sm:$0xff] }
  0x4a   :  { %961 = vmatpush.bf16.msrb.mxu0 %v1682_v36  ;;  %v2019_v35 = vld [vmem:[#allocation5 + $0x64] sm:$0xf]  ;;  %v1451_v36 = vld [vmem:[#allocation5 + $0x68] sm:$0xf0]  ;;  %v2407_v43 = vpack.c.bf16 %v117_v26, %v109_v25  ;;  %v2409_v44 = vpack.c.bf16 %v116_v30, %v108_v27  ;;  %v2411_v47 = vpack.c.bf16 %v118_v32, %v110_v31  ;;  %v1443_v52 = vld [vmem:[#allocation5 + $0x58] sm:$0xf0] }
  0x4b   :  { %975 = vmatpush.bf16.msrb.mxu1 %v1746_v37  ;;  %v2035_v37 = vld [vmem:[#allocation5 + $0xe4] sm:$0xf]  ;;  %v1515_v40 = vld [vmem:[#allocation5 + $0xe8] sm:$0xf0]  ;;  %v2033_v53 = vld [vmem:[#allocation5 + $0xd4] sm:$0xf] }
  0x4c   :  { %989 = vmatpush.bf16.msrb.mxu2 %v1810_v38  ;;  %v1654_v38 = vor.u32 %v2069_v18, %v1651_v20  ;;  %v2051_v41 = vld [vmem:[#allocation5 + $0x164] sm:$0xf]  ;;  %v1643_v46 = vld [vmem:[#allocation5 + $0x1e8] sm:$0xf0]  ;;  %v1518_v49 = vor.u32 %v2035_v37, %v1515_v40  ;;  %v2049_v56 = vld [vmem:[#allocation5 + $0x154] sm:$0xf] }
  0x4d   :  { %1003 = vmatpush.bf16.msrb.mxu3 %v1874_v42  ;;  %v1579_v42 = vld [vmem:[#allocation5 + $0x168] sm:$0xf0]  ;;  %v2067_v45 = vld [vmem:[#allocation5 + $0x1e4] sm:$0xf]  ;;  %v1571_v57 = vld [vmem:[#allocation5 + $0x158] sm:$0xf0] }
  0x4e   :  { %962 = vmatpush.bf16.msrb.mxu0 %v1674_v48  ;;  %v1454_v48 = vor.u32 %v2019_v35, %v1451_v36  ;;  %v1646_v54 = vor.u32 %v2067_v45, %v1643_v46  ;;  %v2065_v59 = vld [vmem:[#allocation5 + $0x1d4] sm:$0xf]  ;;  %v1635_v60 = vld [vmem:[#allocation5 + $0x1d8] sm:$0xf0]  ;;  %v2015_v0 = vld [vmem:[#allocation5 + $0x44] sm:$0xf] }
  0x4f   :  { %976 = vmatpush.bf16.msrb.mxu1 %v1738_v50  ;;  %v1582_v50 = vor.u32 %v2051_v41, %v1579_v42  ;;  %v1435_v2 = vld [vmem:[#allocation5 + $0x48] sm:$0xf0]  ;;  %v2031_v3 = vld [vmem:[#allocation5 + $0xc4] sm:$0xf]  ;;  %v1638_v4 = vor.u32 %v2065_v59, %v1635_v60  ;;  %v2013_v14 = vld [vmem:[#allocation5 + $0x34] sm:$0xf] }
  0x50   :  { %990 = vmatpush.bf16.msrb.mxu2 %v1802_v51  ;;  %v2017_v51 = vld [vmem:[#allocation5 + $0x54] sm:$0xf]  ;;  %v1563_v7 = vld [vmem:[#allocation5 + $0x148] sm:$0xf0]  ;;  %v2063_v8 = vld [vmem:[#allocation5 + $0x1c4] sm:$0xf] }
  0x51   :  { %1004 = vmatpush.bf16.msrb.mxu3 %v1866_v55  ;;  %v1507_v55 = vld [vmem:[#allocation5 + $0xd8] sm:$0xf0]  ;;  %v1446_v61 = vor.u32 %v2017_v51, %v1443_v52  ;;  %v1627_v9 = vld [vmem:[#allocation5 + $0x1c8] sm:$0xf0]  ;;  %v2029_v16 = vld [vmem:[#allocation5 + $0xb4] sm:$0xf] }
  0x52   :  { %963 = vmatpush.bf16.msrb.mxu0 %v1666_v63  ;;  %v1510_v62 = vor.u32 %v2033_v53, %v1507_v55  ;;  %v1574_v63 = vor.u32 %v2049_v56, %v1571_v57  ;;  %v1427_v15 = vld [vmem:[#allocation5 + $0x38] sm:$0xf0]  ;;  %v1630_v18 = vor.u32 %v2063_v8, %v1627_v9  ;;  %v2045_v20 = vld [vmem:[#allocation5 + $0x134] sm:$0xf]  ;;  %v2011_v27 = vld [vmem:[#allocation5 + $0x24] sm:$0xf] }
  0x53   :  { %977 = vmatpush.bf16.msrb.mxu1 %v1730_v5  ;;  %v1499_v5 = vld [vmem:[#allocation5 + $0xc8] sm:$0xf0]  ;;  %v1555_v21 = vld [vmem:[#allocation5 + $0x138] sm:$0xf0]  ;;  %v2061_v22 = vld [vmem:[#allocation5 + $0x1b4] sm:$0xf] }
  0x54   :  { %991 = vmatpush.bf16.msrb.mxu2 %v1794_v6  ;;  %v2047_v6 = vld [vmem:[#allocation5 + $0x144] sm:$0xf]  ;;  %v1502_v12 = vor.u32 %v2031_v3, %v1499_v5  ;;  %v1558_v26 = vor.u32 %v2045_v20, %v1555_v21  ;;  %v1483_v31 = vld [vmem:[#allocation5 + $0xa8] sm:$0xf0]  ;;  %v2009_v40 = vld [vmem:[#allocation5 + $0x14] sm:$0xf] }
  0x55   :  { %1005 = vmatpush.bf16.msrb.mxu3 %v1858_v11  ;;  %v1438_v11 = vor.u32 %v2015_v0, %v1435_v2  ;;  %v1566_v13 = vor.u32 %v2047_v6, %v1563_v7  ;;  %v2043_v32 = vld [vmem:[#allocation5 + $0x124] sm:$0xf]  ;;  %v1611_v35 = vld [vmem:[#allocation5 + $0x1a8] sm:$0xf0]  ;;  %v1411_v41 = vld [vmem:[#allocation5 + $0x18] sm:$0xf0] }
  0x56   :  { %964 = vmatpush.bf16.msrb.mxu0 %v1658_v19  ;;  %v1491_v19 = vld [vmem:[#allocation5 + $0xb8] sm:$0xf0]  ;;  %v2025_v42 = vld [vmem:[#allocation5 + $0x94] sm:$0xf]  ;;  %v1414_v52 = vor.u32 %v2009_v40, %v1411_v41  ;;  %v2007_v53 = vld [vmem:[#allocation5 + $0x4] sm:$0xf] }
  0x57   :  { %978 = vmatpush.bf16.msrb.mxu1 %v1722_v23  ;;  %v1619_v23 = vld [vmem:[#allocation5 + $0x1b8] sm:$0xf0]  ;;  %v1494_v25 = vor.u32 %v2029_v16, %v1491_v19  ;;  %v2023_v57 = vld [vmem:[#allocation5 + $0x84] sm:$0xf]  ;;  %v1467_v59 = vld [vmem:[#allocation5 + $0x88] sm:$0xf0] }
  0x58   :  { %992 = vmatpush.bf16.msrb.mxu2 %v1786_v24  ;;  %v1430_v24 = vor.u32 %v2013_v14, %v1427_v15  ;;  %v1622_v30 = vor.u32 %v2061_v22, %v1619_v23  ;;  %v1475_v46 = vld [vmem:[#allocation5 + $0x98] sm:$0xf0]  ;;  %v2039_v60 = vld [vmem:[#allocation5 + $0x104] sm:$0xf]  ;;  %v1595_v0 = vld [vmem:[#allocation5 + $0x188] sm:$0xf0]  ;;  %v1470_v9 = vor.u32 %v2023_v57, %v1467_v59 }
  0x59   :  { %1006 = vmatpush.bf16.msrb.mxu3 %v1850_v28  ;;  %965 = vmatmul.bf16.vlgmr.msrb.gmra.mxu0 %v2405_v39  ;;  %v1419_v28 = vld [vmem:[#allocation5 + $0x28] sm:$0xf0]  ;;  %v1603_v51 = vld [vmem:[#allocation5 + $0x198] sm:$0xf0]  ;;  %v1478_v55 = vor.u32 %v2025_v42, %v1475_v46  ;;  %v2085_v2 = vld [vmem:[#allocation5 + $0x274] sm:$0xf] }
  0x5a   :  { %1013 = vmatpush.bf16.msra.mxu0 %v1462_v29  ;;  %979 = vmatmul.bf16.vlgmr.msrb.gmra.mxu1 %v2409_v44  ;;  %v2027_v29 = vld [vmem:[#allocation5 + $0xa4] sm:$0xf]  ;;  %v1422_v36 = vor.u32 %v2011_v27, %v1419_v28  ;;  %v1715_v3 = vld [vmem:[#allocation5 + $0x278] sm:$0xf0]  ;;  %v2117_v7 = vld [vmem:[#allocation5 + $0x374] sm:$0xf] }
  0x5b   :  { %1027 = vmatpush.bf16.msra.mxu1 %v1526_v33  ;;  %993 = vmatmul.bf16.vlgmr.msrb.gmra.mxu2 %v2407_v43  ;;  %v1547_v33 = vld [vmem:[#allocation5 + $0x128] sm:$0xf0]  ;;  %v1486_v37 = vor.u32 %v2027_v29, %v1483_v31  ;;  %v1779_v6 = vld [vmem:[#allocation5 + $0x2f8] sm:$0xf0]  ;;  %v1718_v15 = vor.u32 %v2085_v2, %v1715_v3  ;;  %v2083_v16 = vld [vmem:[#allocation5 + $0x264] sm:$0xf] }
  0x5c   :  { %1041 = vmatpush.bf16.msra.mxu2 %v1590_v34  ;;  %1007 = vmatmul.bf16.vlgmr.msrb.gmra.mxu3 %v2411_v47  ;;  %v2059_v34 = vld [vmem:[#allocation5 + $0x1a4] sm:$0xf]  ;;  %v1843_v8 = vld [vmem:[#allocation5 + $0x378] sm:$0xf0]  ;;  %v1771_v22 = vld [vmem:[#allocation5 + $0x2e8] sm:$0xf0] }
  0x5d   :  { %1055 = vmatpush.bf16.msra.mxu3 %v1654_v38  ;;  %v1550_v38 = vor.u32 %v2043_v32, %v1547_v33  ;;  %v1614_v45 = vor.u32 %v2059_v34, %v1611_v35  ;;  %v1846_v20 = vor.u32 %v2117_v7, %v1843_v8  ;;  %v2099_v21 = vld [vmem:[#allocation5 + $0x2e4] sm:$0xf]  ;;  %v1899_v27 = vld [vmem:[#allocation5 + $0x3e8] sm:$0xf0]  ;;  %v2081_v31 = vld [vmem:[#allocation5 + $0x254] sm:$0xf] }
  0x5e   :  { %1014 = vmatpush.bf16.msra.mxu0 %v1454_v48  ;;  %v2041_v48 = vld [vmem:[#allocation5 + $0x114] sm:$0xf]  ;;  %v1774_v29 = vor.u32 %v2099_v21, %v1771_v22  ;;  %v1699_v32 = vld [vmem:[#allocation5 + $0x258] sm:$0xf0]  ;;  %v2079_v46 = vld [vmem:[#allocation5 + $0x244] sm:$0xf] }
  0x5f   :  { %1028 = vmatpush.bf16.msra.mxu1 %v1518_v49  ;;  %v1539_v49 = vld [vmem:[#allocation5 + $0x118] sm:$0xf0]  ;;  %v2097_v33 = vld [vmem:[#allocation5 + $0x2d4] sm:$0xf]  ;;  %v1702_v41 = vor.u32 %v2081_v31, %v1699_v32  ;;  %v2091_v7 = vld [vmem:[#allocation5 + $0x2a4] sm:$0xf] }
  0x60   :  { %1042 = vmatpush.bf16.msra.mxu2 %v1582_v50  ;;  %v2057_v50 = vld [vmem:[#allocation5 + $0x194] sm:$0xf]  ;;  %v1542_v56 = vor.u32 %v2041_v48, %v1539_v49  ;;  %v1763_v35 = vld [vmem:[#allocation5 + $0x2d8] sm:$0xf0]  ;;  %v1691_v48 = vld [vmem:[#allocation5 + $0x248] sm:$0xf0] }
  0x61   :  { %1056 = vmatpush.bf16.msra.mxu3 %v1646_v54  ;;  %v1403_v54 = vld [vmem:[#allocation5 + $0x8] sm:$0xf0]  ;;  %v1891_v40 = vld [vmem:[#allocation5 + $0x3d8] sm:$0xf0]  ;;  %v1766_v42 = vor.u32 %v2097_v33, %v1763_v35  ;;  %v2093_v57 = vld [vmem:[#allocation5 + $0x2b4] sm:$0xf] }
  0x62   :  { %1015 = vmatpush.bf16.msra.mxu0 %v1446_v61  ;;  %v1606_v61 = vor.u32 %v2057_v50, %v1603_v51  ;;  %v1406_v5 = vor.u32 %v2007_v53, %v1403_v54  ;;  %v1755_v50 = vld [vmem:[#allocation5 + $0x2c8] sm:$0xf0]  ;;  %v2111_v51 = vld [vmem:[#allocation5 + $0x344] sm:$0xf]  ;;  %v2089_v21 = vld [vmem:[#allocation5 + $0x294] sm:$0xf] }
  0x63   :  { %1029 = vmatpush.bf16.msra.mxu1 %v1510_v62  ;;  %v1531_v62 = vld [vmem:[#allocation5 + $0x108] sm:$0xf0]  ;;  %v2127_v53 = vld [vmem:[#allocation5 + $0x3c4] sm:$0xf] }
  0x64   :  { %1043 = vmatpush.bf16.msra.mxu2 %v1574_v63  ;;  %v2055_v63 = vld [vmem:[#allocation5 + $0x184] sm:$0xf]  ;;  %v1659_v32 = vld [vmem:[#allocation5 + $0x208] sm:$0xf0] }
  0x65   :  { %1057 = vmatpush.bf16.msra.mxu3 %v1638_v4  ;;  %v2101_v4 = vld [vmem:[#allocation5 + $0x2f4] sm:$0xf]  ;;  %v1598_v14 = vor.u32 %v2055_v63, %v1595_v0  ;;  %v1875_v0 = vld [vmem:[#allocation5 + $0x3b8] sm:$0xf0]  ;;  %v2071_v31 = vld [vmem:[#allocation5 + $0x204] sm:$0xf] }
  0x66   :  { %1016 = vmatpush.bf16.msra.mxu0 %v1438_v11  ;;  %v1534_v11 = vor.u32 %v2039_v60, %v1531_v62  ;;  %v1782_v19 = vor.u32 %v2101_v4, %v1779_v6  ;;  %v1747_v60 = vld [vmem:[#allocation5 + $0x2b8] sm:$0xf0]  ;;  %v2125_v63 = vld [vmem:[#allocation5 + $0x3b4] sm:$0xf]  ;;  %v1675_v6 = vld [vmem:[#allocation5 + $0x228] sm:$0xf0] }
  0x67   :  { %1030 = vmatpush.bf16.msra.mxu1 %v1502_v12  ;;  %v2133_v12 = vld [vmem:[#allocation5 + $0x3f4] sm:$0xf]  ;;  %v1811_v62 = vld [vmem:[#allocation5 + $0x338] sm:$0xf0]  ;;  %v1750_v3 = vor.u32 %v2093_v57, %v1747_v60  ;;  %v1878_v8 = vor.u32 %v2125_v63, %v1875_v0  ;;  %v2087_v33 = vld [vmem:[#allocation5 + $0x284] sm:$0xf] }
  0x68   :  { %1044 = vmatpush.bf16.msra.mxu2 %v1566_v13  ;;  %v1907_v13 = vld [vmem:[#allocation5 + $0x3f8] sm:$0xf0]  ;;  %v1723_v35 = vld [vmem:[#allocation5 + $0x288] sm:$0xf0] }
  0x69   :  { %1058 = vmatpush.bf16.msra.mxu3 %v1630_v18  ;;  %v1707_v18 = vld [vmem:[#allocation5 + $0x268] sm:$0xf0]  ;;  %v1910_v23 = vor.u32 %v2133_v12, %v1907_v13  ;;  %v2123_v13 = vld [vmem:[#allocation5 + $0x3a4] sm:$0xf] }
  0x6a   :  { %1017 = vmatpush.bf16.msra.mxu0 %v1430_v24  ;;  %v2115_v24 = vld [vmem:[#allocation5 + $0x364] sm:$0xf]  ;;  %v1710_v28 = vor.u32 %v2083_v16, %v1707_v18  ;;  %v1803_v12 = vld [vmem:[#allocation5 + $0x328] sm:$0xf0] }
  0x6b   :  { %1031 = vmatpush.bf16.msra.mxu1 %v1494_v25  ;;  %v1835_v25 = vld [vmem:[#allocation5 + $0x368] sm:$0xf0] }
  0x6c   :  { %1045 = vmatpush.bf16.msra.mxu2 %v1558_v26  ;;  %v2131_v26 = vld [vmem:[#allocation5 + $0x3e4] sm:$0xf] }
  0x6d   :  { %1059 = vmatpush.bf16.msra.mxu3 %v1622_v30  ;;  %v1838_v30 = vor.u32 %v2115_v24, %v1835_v25  ;;  %v1902_v34 = vor.u32 %v2131_v26, %v1899_v27  ;;  %v2105_v24 = vld [vmem:[#allocation5 + $0x314] sm:$0xf]  ;;  %v1795_v25 = vld [vmem:[#allocation5 + $0x318] sm:$0xf0] }
  0x6e   :  { %1018 = vmatpush.bf16.msra.mxu0 %v1422_v36  ;;  %v2113_v36 = vld [vmem:[#allocation5 + $0x354] sm:$0xf]  ;;  %v1859_v27 = vld [vmem:[#allocation5 + $0x398] sm:$0xf0] }
  0x6f   :  { %1032 = vmatpush.bf16.msra.mxu1 %v1486_v37  ;;  %v1827_v37 = vld [vmem:[#allocation5 + $0x358] sm:$0xf0]  ;;  %v2121_v26 = vld [vmem:[#allocation5 + $0x394] sm:$0xf] }
  0x70   :  { %1046 = vmatpush.bf16.msra.mxu2 %v1550_v38  ;;  %v2129_v38 = vld [vmem:[#allocation5 + $0x3d4] sm:$0xf] }
  0x71   :  { %1060 = vmatpush.bf16.msra.mxu3 %v1614_v45  ;;  %v1830_v45 = vor.u32 %v2113_v36, %v1827_v37  ;;  %v1894_v49 = vor.u32 %v2129_v38, %v1891_v40  ;;  %v2103_v36 = vld [vmem:[#allocation5 + $0x304] sm:$0xf]  ;;  %v1787_v37 = vld [vmem:[#allocation5 + $0x308] sm:$0xf0] }
  0x72   :  { %1019 = vmatpush.bf16.msra.mxu0 %v1414_v52  ;;  %v1819_v52 = vld [vmem:[#allocation5 + $0x348] sm:$0xf0]  ;;  %v2119_v38 = vld [vmem:[#allocation5 + $0x384] sm:$0xf] }
  0x73   :  { %1033 = vmatpush.bf16.msra.mxu1 %v1478_v55  ;;  %v2077_v55 = vld [vmem:[#allocation5 + $0x234] sm:$0xf]  ;;  %v1851_v40 = vld [vmem:[#allocation5 + $0x388] sm:$0xf0] }
  0x74   :  { %1047 = vmatpush.bf16.msra.mxu2 %v1542_v56  ;;  %v1683_v56 = vld [vmem:[#allocation5 + $0x238] sm:$0xf0] }
  0x75   :  { %1061 = vmatpush.bf16.msra.mxu3 %v1606_v61  ;;  %v2109_v61 = vld [vmem:[#allocation5 + $0x334] sm:$0xf]  ;;  %v1686_v2 = vor.u32 %v2077_v55, %v1683_v56 }
  0x76   :  { %1020 = vmatpush.bf16.msra.mxu0 %v1406_v5  ;;  %v1814_v4 = vor.u32 %v2109_v61, %v1811_v62  ;;  %v2075_v5 = vld [vmem:[#allocation5 + $0x224] sm:$0xf] }
  0x77   :  { %1034 = vmatpush.bf16.msra.mxu1 %v1470_v9  ;;  %v1739_v9 = vld [vmem:[#allocation5 + $0x2a8] sm:$0xf0] }
  0x78   :  { %1048 = vmatpush.bf16.msra.mxu2 %v1534_v11  ;;  %v2107_v11 = vld [vmem:[#allocation5 + $0x324] sm:$0xf]  ;;  %v1742_v16 = vor.u32 %v2091_v7, %v1739_v9 }
  0x79   :  { %1062 = vmatpush.bf16.msra.mxu3 %v1598_v14  ;;  %1021 = vmatmul.bf16.vlgmr.msra.gmra.mxu0 %v2393_v58  ;;  %v1883_v58 = vld [vmem:[#allocation5 + $0x3c8] sm:$0xf0]  ;;  %v1806_v18 = vor.u32 %v2107_v11, %v1803_v12 }
  0x7a   :  { %1069 = vmatpush.bf16.msrb.mxu0 %v1718_v15  ;;  %1035 = vmatmul.bf16.vlgmr.msra.gmra.mxu1 %v2399_v10  ;;  %v1822_v10 = vor.u32 %v2111_v51, %v1819_v52  ;;  %v1886_v59 = vor.u32 %v2127_v53, %v1883_v58  ;;  %v1867_v14 = vld [vmem:[#allocation5 + $0x3a8] sm:$0xf0]  ;;  %v1678_v15 = vor.u32 %v2075_v5, %v1675_v6  ;;  %v2138_v51 = vld [vmem:[#allocation8 + $0x18] sm:$0xff]  ;;  %v2137_v53 = vld [vmem:[#allocation8 + $0x10] sm:$0xff] }
  0x7b   :  { %1083 = vmatpush.bf16.msrb.mxu1 %v1782_v19  ;;  %1049 = vmatmul.bf16.vlgmr.msra.gmra.mxu2 %v2395_v1  ;;  %v2095_v1 = vld [vmem:[#allocation5 + $0x2c4] sm:$0xf]  ;;  %v2073_v19 = vld [vmem:[#allocation5 + $0x214] sm:$0xf]  ;;  %v1870_v22 = vor.u32 %v2123_v13, %v1867_v14  ;;  %v2425_v58 = vld [vmem:[#allocation7] sm:$0x3] }
  0x7c   :  { %1097 = vmatpush.bf16.msrb.mxu2 %v1846_v20  ;;  %1063 = vmatmul.bf16.vlgmr.msra.gmra.mxu3 %v2401_v17  ;;  %v1694_v17 = vor.u32 %v2079_v46, %v1691_v48  ;;  %v1758_v54 = vor.u32 %v2095_v1, %v1755_v50  ;;  %v1667_v20 = vld [vmem:[#allocation5 + $0x218] sm:$0xf0]  ;;  %v1854_v46 = vor.u32 %v2119_v38, %v1851_v40  ;;  %v2141_v1 = vld [vmem:[#allocation8 + $0x30] sm:$0xff]  ;;  %v2139_v50 = vld [vmem:[#allocation8 + $0x20] sm:$0xff] }
  0x7d   :  { %1111 = vmatpush.bf16.msrb.mxu3 %v1910_v23  ;;  %v1731_v23 = vld [vmem:[#allocation5 + $0x298] sm:$0xf0] }
  0x7e   :  { %1070 = vmatpush.bf16.msrb.mxu0 %v1710_v28  ;;  %v1670_v28 = vor.u32 %v2073_v19, %v1667_v20  ;;  %v2142_v48 = vld [vmem:[#allocation8 + $0x38] sm:$0xff] }
  0x7f   :  { %1084 = vmatpush.bf16.msrb.mxu1 %v1774_v29  ;;  %v1734_v29 = vor.u32 %v2089_v21, %v1731_v23 }
  0x80   :  { %1098 = vmatpush.bf16.msrb.mxu2 %v1838_v30  ;;  %v1798_v30 = vor.u32 %v2105_v24, %v1795_v25 }
  0x81   :  { %1112 = vmatpush.bf16.msrb.mxu3 %v1902_v34  ;;  %v1862_v34 = vor.u32 %v2121_v26, %v1859_v27  ;;  %v2148_v27 = vld [vmem:[#allocation8 + $0x68] sm:$0xff] }
  0x82   :  { %1071 = vmatpush.bf16.msrb.mxu0 %v1702_v41  ;;  %v1662_v41 = vor.u32 %v2071_v31, %v1659_v32  ;;  %v2144_v32 = vld [vmem:[#allocation8 + $0x48] sm:$0xff] }
  0x83   :  { %1085 = vmatpush.bf16.msrb.mxu1 %v1766_v42  ;;  %v1726_v42 = vor.u32 %v2087_v33, %v1723_v35  ;;  %v2143_v35 = vld [vmem:[#allocation8 + $0x40] sm:$0xff] }
  0x84   :  { %1099 = vmatpush.bf16.msrb.mxu2 %v1830_v45  ;;  %v1790_v45 = vor.u32 %v2103_v36, %v1787_v37 }
  0x85   :  { %1113 = vmatpush.bf16.msrb.mxu3 %v1894_v49  ;;  %v2140_v49 = vld [vmem:[#allocation8 + $0x28] sm:$0xff] }
  0x86   :  { %1072 = vmatpush.bf16.msrb.mxu0 %v1694_v17 }
  0x87   :  { %1086 = vmatpush.bf16.msrb.mxu1 %v1758_v54 }
  0x88   :  { %1100 = vmatpush.bf16.msrb.mxu2 %v1822_v10  ;;  %v2135_v10 = vld [vmem:[#allocation8] sm:$0xff] }
  0x89   :  { %1114 = vmatpush.bf16.msrb.mxu3 %v1886_v59 }
  0x8a   :  { %1073 = vmatpush.bf16.msrb.mxu0 %v1686_v2 }
  0x8b   :  { %1087 = vmatpush.bf16.msrb.mxu1 %v1750_v3 }
  0x8c   :  { %1101 = vmatpush.bf16.msrb.mxu2 %v1814_v4 }
  0x8d   :  { %1115 = vmatpush.bf16.msrb.mxu3 %v1878_v8 }
  0x8e   :  { %1074 = vmatpush.bf16.msrb.mxu0 %v1678_v15 }
  0x8f   :  { %1088 = vmatpush.bf16.msrb.mxu1 %v1742_v16 }
  0x90   :  { %1102 = vmatpush.bf16.msrb.mxu2 %v1806_v18  ;;  %v2150_v18 = vld [vmem:[#allocation8 + $0x78] sm:$0xff] }
  0x91   :  { %1116 = vmatpush.bf16.msrb.mxu3 %v1870_v22  ;;  %v2149_v22 = vld [vmem:[#allocation8 + $0x70] sm:$0xff] }
  0x92   :  { %1075 = vmatpush.bf16.msrb.mxu0 %v1670_v28  ;;  %v2147_v28 = vld [vmem:[#allocation8 + $0x60] sm:$0xff] }
  0x93   :  { %1089 = vmatpush.bf16.msrb.mxu1 %v1734_v29  ;;  %v2146_v29 = vld [vmem:[#allocation8 + $0x58] sm:$0xff] }
  0x94   :  { %1103 = vmatpush.bf16.msrb.mxu2 %v1798_v30  ;;  %v2145_v30 = vld [vmem:[#allocation8 + $0x50] sm:$0xff] }
  0x95   :  { %1117 = vmatpush.bf16.msrb.mxu3 %v1862_v34  ;;  %v258_v34 = vperm.slane %v2425_v58, 1 }
  0x96   :  { %1076 = vmatpush.bf16.msrb.mxu0 %v1662_v41 }
  0x97   :  { %1090 = vmatpush.bf16.msrb.mxu1 %v1726_v42 }
  0x98   :  { %1104 = vmatpush.bf16.msrb.mxu2 %v1790_v45 }
  0x99   :  { %1118 = vmatpush.bf16.msrb.mxu3 %v1854_v46  ;;  %1077 = vmatmul.bf16.vlgmr.msrb.gmra.mxu0 %v2405_v39 }
  0x9a   :  { %1091 = vmatmul.bf16.vlgmr.msrb.gmra.mxu1 %v2409_v44  ;;  %1263 = vmatpush.bf16.msra.mxu0 %v2142_v48  ;;  %v2136_v44 = vld [vmem:[#allocation8 + $0x8] sm:$0xff] }
  0x9b   :  { %1105 = vmatmul.bf16.vlgmr.msrb.gmra.mxu2 %v2407_v43  ;;  %v257_v43 = vperm.slane %v2425_v58, 0  ;;  %1277 = vmatpush.bf16.msra.mxu1 %v2150_v18 }
  0x9c   :  { %1119 = vmatmul.bf16.vlgmr.msrb.gmra.mxu3 %v2411_v47 }
  0x9e   :  { %1264 = vmatpush.bf16.msra.mxu0 %v2141_v1 }
  0x9f   :  { %1278 = vmatpush.bf16.msra.mxu1 %v2149_v22 }
  0xa2   :  { %1265 = vmatpush.bf16.msra.mxu0 %v2140_v49 }
  0xa3   :  { %1279 = vmatpush.bf16.msra.mxu1 %v2148_v27 }
  0xa6   :  { %1266 = vmatpush.bf16.msra.mxu0 %v2139_v50 }
  0xa7   :  { %1280 = vmatpush.bf16.msra.mxu1 %v2147_v28 }
  0xaa   :  { %1267 = vmatpush.bf16.msra.mxu0 %v2138_v51 }
  0xab   :  { %1281 = vmatpush.bf16.msra.mxu1 %v2146_v29 }
  0xae   :  { %1268 = vmatpush.bf16.msra.mxu0 %v2137_v53 }
  0xaf   :  { %1282 = vmatpush.bf16.msra.mxu1 %v2145_v30 }
  0xb2   :  { %1269 = vmatpush.bf16.msra.mxu0 %v2136_v44 }
  0xb3   :  { %1283 = vmatpush.bf16.msra.mxu1 %v2144_v32 }
  0xb6   :  { %v910_v52 = vpop.f32.mrf.mxu0  ;;  %1270 = vmatpush.bf16.msra.mxu0 %v2135_v10 }
  0xb7   :  { %v924_v39 = vpop.f32.mrf.mxu1  ;;  %v911_v17 = vadd.f32 %v910_v52, %v257_v43  ;;  %1284 = vmatpush.bf16.msra.mxu1 %v2143_v35 }
  0xb9   :  { %v925_v57 = vadd.f32 %v924_v39, %v911_v17 }
  0xbe   :  { %v938_v47 = vpop.f32.mrf.mxu2  ;;  %v912_v55 = vpop.f32.mrf.mxu0 }
  0xbf   :  { %v952_v54 = vpop.f32.mrf.mxu3  ;;  %v926_v56 = vpop.f32.mrf.mxu1  ;;  %v913_v59 = vadd.f32 %v912_v55, %v257_v43  ;;  %v939_v60 = vadd.f32 %v938_v47, %v925_v57 }
  0xc1   :  { %v927_v62 = vadd.f32 %v926_v56, %v913_v59  ;;  %v953_v0 = vadd.f32 %v952_v54, %v939_v60 }
  0xc6   :  { %v940_v61 = vpop.f32.mrf.mxu2 }
  0xc7   :  { %v954_v63 = vpop.f32.mrf.mxu3  ;;  %v941_v4 = vadd.f32 %v940_v61, %v927_v62 }
  0xc9   :  { %v955_v6 = vadd.f32 %v954_v63, %v941_v4  ;;  %v2157_v4 = vld [vmem:[#allocation10 + $0x30] sm:$0xff] }
  0xd6   :  { %v966_v2 = vpop.f32.mrf.mxu0 }
  0xd7   :  { %v980_v3 = vpop.f32.mrf.mxu1  ;;  %v967_v5 = vadd.f32 %v966_v2, %v953_v0 }
  0xd9   :  { %v981_v8 = vadd.f32 %v980_v3, %v967_v5  ;;  %v2158_v3 = vld [vmem:[#allocation10 + $0x38] sm:$0xff]  ;;  %v2156_v5 = vld [vmem:[#allocation10 + $0x28] sm:$0xff] }
  0xda   :  { %1362 = vmatpush.bf16.msra.mxu2 %v2158_v3 }
  0xde   :  { %v994_v7 = vpop.f32.mrf.mxu2  ;;  %v968_v9 = vpop.f32.mrf.mxu0  ;;  %1363 = vmatpush.bf16.msra.mxu2 %v2157_v4 }
  0xdf   :  { %v1008_v11 = vpop.f32.mrf.mxu3  ;;  %v969_v12 = vadd.f32 %v968_v9, %v955_v6  ;;  %v982_v13 = vpop.f32.mrf.mxu1  ;;  %v995_v14 = vadd.f32 %v994_v7, %v981_v8  ;;  %v2155_v6 = vld [vmem:[#allocation10 + $0x20] sm:$0xff]  ;;  %v2154_v7 = vld [vmem:[#allocation10 + $0x18] sm:$0xff]  ;;  %v2153_v8 = vld [vmem:[#allocation10 + $0x10] sm:$0xff] }
  0xe0   :  { %v2152_v9 = vld [vmem:[#allocation10 + $0x8] sm:$0xff] }
  0xe1   :  { %v983_v15 = vadd.f32 %v982_v13, %v969_v12  ;;  %v1009_v19 = vadd.f32 %v1008_v11, %v995_v14  ;;  %v2151_v11 = vld [vmem:[#allocation10] sm:$0xff]  ;;  %v2170_v14 = vld [vmem:[%s2445_s4] ss:$0 sm:$0xff] }
  0xe2   :  { %1364 = vmatpush.bf16.msra.mxu2 %v2156_v5 }
  0xe3   :  { %v1125_v24 = vmax.f32 %v1009_v19, 0.0 }
  0xe6   :  { %v996_v16 = vpop.f32.mrf.mxu2  ;;  %1365 = vmatpush.bf16.msra.mxu2 %v2155_v6 }
  0xe7   :  { %v997_v20 = vadd.f32 %v996_v16, %v983_v15  ;;  %v1010_v21 = vpop.f32.mrf.mxu3 }
  0xe9   :  { %v1011_v23 = vadd.f32 %v1010_v21, %v997_v20 }
  0xea   :  { %1366 = vmatpush.bf16.msra.mxu2 %v2154_v7 }
  0xeb   :  { %v1127_v25 = vmax.f32 %v1011_v23, 0.0 }
  0xed   :  { %v1129_v26 = vpack.c.bf16 %v1127_v25, %v1125_v24  ;;  %v2171_v25 = vld [vmem:[%s2447_s6] ss:$0 sm:$0xff] }
  0xee   :  { %1367 = vmatpush.bf16.msra.mxu2 %v2153_v8 }
  0xef   :  { %1271 = vmatmul.bf16.vlgmr.msra.gmra.mxu0 %v1129_v26 }
  0xf2   :  { %1368 = vmatpush.bf16.msra.mxu2 %v2152_v9 }
  0xf6   :  { %v1022_v31 = vpop.f32.mrf.mxu0  ;;  %1369 = vmatpush.bf16.msra.mxu2 %v2151_v11 }
  0xf7   :  { %v1036_v33 = vpop.f32.mrf.mxu1  ;;  %v1023_v38 = vadd.f32 %v1022_v31, %v258_v34 }
  0xf9   :  { %v1037_v42 = vadd.f32 %v1036_v33, %v1023_v38 }
  0xfe   :  { %v1050_v36 = vpop.f32.mrf.mxu2  ;;  %v1024_v40 = vpop.f32.mrf.mxu0 }
  0xff   :  { %v1064_v37 = vpop.f32.mrf.mxu3  ;;  %v1038_v41 = vpop.f32.mrf.mxu1  ;;  %v1025_v45 = vadd.f32 %v1024_v40, %v258_v34  ;;  %v1051_v48 = vadd.f32 %v1050_v36, %v1037_v42 }
 0x101   :  { %v1039_v1 = vadd.f32 %v1038_v41, %v1025_v45  ;;  %v1065_v52 = vadd.f32 %v1064_v37, %v1051_v48 }
 0x106   :  { %v1052_v46 = vpop.f32.mrf.mxu2 }
 0x107   :  { %v1066_v49 = vpop.f32.mrf.mxu3  ;;  %v1053_v53 = vadd.f32 %v1052_v46, %v1039_v1 }
 0x109   :  { %v1067_v58 = vadd.f32 %v1066_v49, %v1053_v53 }
 0x116   :  { %v1078_v50 = vpop.f32.mrf.mxu0 }
 0x117   :  { %v1092_v51 = vpop.f32.mrf.mxu1  ;;  %v1079_v39 = vadd.f32 %v1078_v50, %v1065_v52 }
 0x119   :  { %v1093_v17 = vadd.f32 %v1092_v51, %v1079_v39 }
 0x11e   :  { %v1106_v43 = vpop.f32.mrf.mxu2  ;;  %v1080_v47 = vpop.f32.mrf.mxu0 }
 0x11f   :  { %v1120_v44 = vpop.f32.mrf.mxu3  ;;  %v1081_v54 = vadd.f32 %v1080_v47, %v1067_v58  ;;  %v1107_v10 = vadd.f32 %v1106_v43, %v1093_v17  ;;  %v1094_v55 = vpop.f32.mrf.mxu1 }
 0x121   :  { %v1095_v56 = vadd.f32 %v1094_v55, %v1081_v54  ;;  %v1121_v59 = vadd.f32 %v1120_v44, %v1107_v10 }
 0x123   :  { %v1126_v63 = vmax.f32 %v1121_v59, 0.0 }
 0x126   :  { %v1108_v57 = vpop.f32.mrf.mxu2 }
 0x127   :  { %v1109_v60 = vadd.f32 %v1108_v57, %v1095_v56  ;;  %v1122_v61 = vpop.f32.mrf.mxu3 }
 0x129   :  { %v1123_v62 = vadd.f32 %v1122_v61, %v1109_v60 }
 0x12b   :  { %v1128_v0 = vmax.f32 %v1123_v62, 0.0 }
 0x12d   :  { %v1130_v2 = vpack.c.bf16 %v1128_v0, %v1126_v63 }
 0x12f   :  { %1285 = vmatmul.bf16.vlgmr.msra.gmra.mxu1 %v1130_v2 }
 0x16c   :  { %v1272_v12 = vpop.f32.mrf.mxu0 }
 0x16d   :  { %v1273_v16 = vadd.f32 %v2170_v14, %v1272_v12 }
 0x174   :  { %v1274_v15 = vpop.f32.mrf.mxu0 }
 0x175   :  { %v1275_v18 = vadd.f32 %v2170_v14, %v1274_v15 }
 0x1ac   :  { %v1286_v13 = vpop.f32.mrf.mxu1 }
 0x1ad   :  { %v1287_v19 = vadd.f32 %v1286_v13, %v1273_v16 }
 0x1af   :  { %v1291_v22 = vmax.f32 %v1287_v19, 0.0 }
 0x1b4   :  { %v1288_v20 = vpop.f32.mrf.mxu1 }
 0x1b5   :  { %v1289_v21 = vadd.f32 %v1288_v20, %v1275_v18 }
 0x1b7   :  { %v1292_v23 = vmax.f32 %v1289_v21, 0.0 }
 0x1b9   :  { %v1293_v24 = vpack.c.bf16 %v1292_v23, %v1291_v22 }
 0x1bb   :  { %1370 = vmatmul.bf16.vlgmr.msra.gmra.mxu2 %v1293_v24 }
 0x23e   :  { %v1371_v26 = vpop.f32.mrf.mxu2 }
 0x23f   :  { %v1372_v27 = vadd.f32 %v2171_v25, %v1371_v26 }
 0x241   :  { %1376 = vst [vmem:[#allocation11] sm:$0xff] %v1372_v27 }
 0x246   :  { %v1373_v28 = vpop.f32.mrf.mxu2 }
 0x247   :  { %v1374_v29 = vadd.f32 %v2171_v25, %v1373_v28 }
 0x249   :  { %1377 = vst [vmem:[#allocation11 + $0x8] sm:$0xff] %v1374_v29 }
 0x24a   :  { %1390 = dma.vmem_to_hbm [thread:$0]  %s1383_s10, 256, %s1385_s12, [#allocation4], %s2325_s29, %s2325_s29, %s2326_s30  }
 0x24b   :  { %2322 = dma.done.wait [#allocation4], 256  }
 0x24c   :  { %2323 = vsyncadd [#allocation4], 4294967040 }
 0x24d   :  { %1395 = vsyncpa [#allocation3], 1 }
 0x24e   :  { %1396 = vsyncpa [#allocation6], 1 }
 0x24f   :  { %1397 = vsyncpa [#allocation9], 1 }
 0x250   :  { %1398 = vsyncpa [#allocation4], 1 }

</bundles_post_ra>
